<compile_context>
chip_gen: v5e
topology: v5e:2x2
jax: 0.10.0
libtpu: 0.0.40
codegen_flags: <defaults>
</compile_context>

<pallas_src>
import jax
import jax.numpy as jnp
from jax import lax
from jax.experimental import pallas as pl
from jax.experimental.pallas import tpu as pltpu


# ------------------------------ fused kernel ---------------------------------
def _make_fused_kernel(B, T, E, H, O, num_layers, vocab):
    G = 4 * H

    def kernel(ids_ref, emb_ref, *refs):
        # refs = [w_ih_0, w_hh_0, b_0, ..., w_ih_{L-1}, w_hh_{L-1}, b_{L-1},
        #         fc_w, fc_b, out_ref]
        w_ih = [refs[3 * l + 0][...] for l in range(num_layers)]   # (in_l, 4H)
        w_hh = [refs[3 * l + 1][...] for l in range(num_layers)]   # (H, 4H)
        bias = [refs[3 * l + 2][...] for l in range(num_layers)]   # (1, 4H)
        fc_w = refs[3 * num_layers + 0][...]                       # (H, O)
        fc_b = refs[3 * num_layers + 1][...]                       # (1, O)
        out_ref = refs[3 * num_layers + 2]                         # (T*B, O)

        # ---- Hoisted embedding gather (off the serial chain), ids clamped. ----
        rows = []
        for t in range(T):
            for b in range(B):
                idx = jnp.clip(ids_ref[b, t], 0, vocab - 1)
                rows.append(emb_ref[pl.ds(idx, 1), :])             # (1, E)
        x_all = jnp.concatenate(rows, axis=0)                      # (T*B, E), row = t*B + b

        # ---- Layer-0 input projection for ALL timesteps in one matmul. --------
        # (bias and the 0.5 sigmoid pre-scale are already folded into w_ih/bias)
        g0_all = (
            jnp.dot(x_all, w_ih[0], preferred_element_type=jnp.float32) + bias[0]
        )                                                          # (T*B, 4H)

        # Lane mask: last H lanes of the 4H gate vector hold the tanh ("g") gate.
        g_mask = lax.broadcasted_iota(jnp.int32, (B, G), 1) >= (3 * H)

        h = [jnp.zeros((B, H), jnp.float32) for _ in range(num_layers)]
        c = [jnp.zeros((B, H), jnp.float32) for _ in range(num_layers)]

        # TODO(synk): nn.LSTM inter-layer dropout is train-mode only; omitted (eval forward).
        step_h = []
        x = None
        for t in range(T):  # fully unrolled: T is small and static
            for l in range(num_layers):
                rec = jnp.dot(h[l], w_hh[l], preferred_element_type=jnp.float32)
                if l == 0:
                    gates = g0_all[t * B:(t + 1) * B, :] + rec
                else:
                    gates = (
                        jnp.dot(x, w_ih[l], preferred_element_type=jnp.float32)
                        + rec + bias[l]
                    )                                              # (B, 4H)
                # Whole-vreg activation: one tanh for all gates.
                # i/f/o pre-activations were pre-scaled by 0.5 at pack time, so
                #   sigmoid(z) = 0.5 * tanh(0.5 * z) + 0.5  needs only the post-select.
                th = jnp.tanh(gates)
                act = jnp.where(g_mask, th, 0.5 * th + 0.5)        # (i,f,o | g)

                i_a = act[:, 0 * H:1 * H]
                f_a = act[:, 1 * H:2 * H]
                o_a = act[:, 2 * H:3 * H]
                g_a = act[:, 3 * H:4 * H]

                c[l] = f_a * c[l] + i_a * g_a
                h[l] = o_a * jnp.tanh(c[l])
                x = h[l]
            step_h.append(x)                                       # top-layer h_t, (B, H)

        # ---- Batched FC + log_softmax (outside the serialized region). --------
        h_all = jnp.concatenate(step_h, axis=0)                    # (T*B, H), row = t*B + b
        logits = jnp.dot(h_all, fc_w, preferred_element_type=jnp.float32) + fc_b
        m = jnp.max(logits, axis=-1, keepdims=True)
        z = logits - m
        lse = jnp.log(jnp.sum(jnp.exp(z), axis=-1, keepdims=True))
        out_ref[...] = (z - lse).astype(out_ref.dtype)             # (T*B, O)

    return kernel


# ------------------------------ parameters -----------------------------------
def init_params(key, input_dim, embedding_dim, hidden_dim, output_dim, num_layers):
    """Raw PyTorch-layout parameters (w_ih: (4H, in), gate order i,f,g,o)."""
    ks = jax.random.split(key, 2 + 4 * num_layers + 2)
    scale = 1.0 / jnp.sqrt(hidden_dim)
    params = {}
    params["embedding"] = jax.random.normal(
        ks[0], (input_dim, embedding_dim), jnp.float32
    )
    layers = []
    idx = 2
    for layer in range(num_layers):
        in_dim = embedding_dim if layer == 0 else hidden_dim
        w_ih = jax.random.uniform(ks[idx + 0], (4 * hidden_dim, in_dim),
                                  jnp.float32, -scale, scale)
        w_hh = jax.random.uniform(ks[idx + 1], (4 * hidden_dim, hidden_dim),
                                  jnp.float32, -scale, scale)
        b_ih = jax.random.uniform(ks[idx + 2], (4 * hidden_dim,),
                                  jnp.float32, -scale, scale)
        b_hh = jax.random.uniform(ks[idx + 3], (4 * hidden_dim,),
                                  jnp.float32, -scale, scale)
        layers.append((w_ih, w_hh, b_ih, b_hh))
        idx += 4
    params["lstm"] = layers
    params["fc_w"] = jax.random.uniform(ks[idx], (output_dim, hidden_dim),
                                        jnp.float32, -scale, scale)
    params["fc_b"] = jax.random.uniform(ks[idx + 1], (output_dim,),
                                        jnp.float32, -scale, scale)
    return params


def pack_params(params):
    """One-time pre-pack:
       * reorder gates from PyTorch (i,f,g,o) to kernel order (i,f,o,g)
       * transpose to (in, 4H) / (H, 4H) matmul layout
       * fold b_ih + b_hh into one bias
       * fold the 0.5 sigmoid pre-scale into the i/f/o columns of W_ih, W_hh and bias.
    """
    H = params["lstm"][0][1].shape[1]
    perm = jnp.concatenate([
        jnp.arange(0 * H, 1 * H),   # i
        jnp.arange(1 * H, 2 * H),   # f
        jnp.arange(3 * H, 4 * H),   # o
        jnp.arange(2 * H, 3 * H),   # g
    ])
    # columns (after perm): i,f,o scaled by 0.5 (sigmoid-via-tanh), g unscaled
    col_scale = jnp.concatenate(
        [jnp.full((3 * H,), 0.5, jnp.float32), jnp.ones((H,), jnp.float32)]
    )
    layers = []
    for (w_ih, w_hh, b_ih, b_hh) in params["lstm"]:
        w_ih_k = jnp.transpose(w_ih[perm, :]) * col_scale[None, :]    # (in, 4H)
        w_hh_k = jnp.transpose(w_hh[perm, :]) * col_scale[None, :]    # (H, 4H)
        b_k = ((b_ih + b_hh)[perm] * col_scale).reshape(1, -1)        # (1, 4H)
        layers.append((w_ih_k, w_hh_k, b_k))
    return {
        "embedding": params["embedding"],                             # (V, E)
        "layers": layers,
        "fc_w": jnp.transpose(params["fc_w"]),                        # (H, O)
        "fc_b": params["fc_b"].reshape(1, -1),                        # (1, O)
    }


# -------------------------------- forward ------------------------------------
def _forward_impl(packed, text):
    emb = packed["embedding"]
    layers = packed["layers"]
    fc_w = packed["fc_w"]
    fc_b = packed["fc_b"]

    B, T = text.shape
    V, E = emb.shape
    H, O = fc_w.shape
    L = len(layers)

    kernel = _make_fused_kernel(B, T, E, H, O, L, V)

    flat_weights = []
    for (w_ih, w_hh, b) in layers:
        flat_weights += [w_ih, w_hh, b]
    n_vmem_in = 1 + len(flat_weights) + 2  # emb + layer weights + fc_w + fc_b

    out_flat = pl.pallas_call(
        kernel,
        out_shape=jax.ShapeDtypeStruct((T * B, O), jnp.float32),
        in_specs=[pl.BlockSpec(memory_space=pltpu.MemorySpace.SMEM)]
                 + [pl.BlockSpec(memory_space=pltpu.MemorySpace.VMEM)] * n_vmem_in,
        out_specs=pl.BlockSpec(memory_space=pltpu.MemorySpace.VMEM),
    )(text.astype(jnp.int32), emb, *flat_weights, fc_w, fc_b)

    # rows of out_flat are ordered t*B + b  ->  (T, B, O)  ->  (B, T, O)
    return jnp.transpose(out_flat.reshape(T, B, O), (1, 0, 2))


lstm_tagger_forward = jax.jit(_forward_impl)


# ------------------------- pure-JAX reference (check) -------------------------
def _reference_forward(params, text):
    x = params["embedding"][text]                            # (B, T, E)
    Bsz = x.shape[0]
    for (w_ih, w_hh, b_ih, b_hh) in params["lstm"]:
        H = w_hh.shape[1]

        def step(carry, x_t):
            h, c = carry
            g = x_t @ w_ih.T + h @ w_hh.T + b_ih + b_hh
            i = jax.nn.sigmoid(g[:, 0 * H:1 * H])
            f = jax.nn.sigmoid(g[:, 1 * H:2 * H])
            gg = jnp.tanh(g[:, 2 * H:3 * H])
            o = jax.nn.sigmoid(g[:, 3 * H:4 * H])
            c = f * c + i * gg
            h = o * jnp.tanh(c)
            return (h, c), h

        init = (jnp.zeros((Bsz, H), jnp.float32), jnp.zeros((Bsz, H), jnp.float32))
        _, hs = lax.scan(step, init, jnp.transpose(x, (1, 0, 2)))
        x = jnp.transpose(hs, (1, 0, 2))
    logits = x @ params["fc_w"].T + params["fc_b"]
    m = jnp.max(logits, axis=-1, keepdims=True)
    z = logits - m
    return z - jnp.log(jnp.sum(jnp.exp(z), axis=-1, keepdims=True))


# ---------------------------------- main --------------------------------------
if __name__ == "__main__":
    INPUT_DIM = 50        # vocab size
    EMBEDDING_DIM = 32
    HIDDEN_DIM = 32
    OUTPUT_DIM = 16
    NUM_LAYERS = 2
    B, T = 2, 8

    key = jax.random.PRNGKey(0)
    k_params, k_text = jax.random.split(key)
    params = init_params(k_params, INPUT_DIM, EMBEDDING_DIM, HIDDEN_DIM,
                         OUTPUT_DIM, NUM_LAYERS)
    packed = pack_params(params)
    text = jax.random.randint(k_text, (B, T), 0, INPUT_DIM, dtype=jnp.int32)

    tag_scores = lstm_tagger_forward(packed, text)
    jax.block_until_ready(tag_scores)

    assert tag_scores.shape == (B, T, OUTPUT_DIM)
    # log_softmax rows must sum (in prob space) to ~1
    assert bool(jnp.allclose(jnp.sum(jnp.exp(tag_scores), axis=-1), 1.0, atol=1e-4))
    # match pure-JAX reference LSTM tagger
    ref = _reference_forward(params, text)
    assert bool(jnp.allclose(tag_scores, ref, atol=1e-4, rtol=1e-4))
    print("KERNEL_OK")
</pallas_src>

<mosaic_0001>
module attributes {stable_mosaic.version = 11 : i64} {
  func.func @kernel(%arg0: memref<2x8xi32, #tpu.memory_space<smem>>, %arg1: memref<50x32xf32, #tpu.memory_space<vmem>>, %arg2: memref<32x128xf32, #tpu.memory_space<vmem>>, %arg3: memref<32x128xf32, #tpu.memory_space<vmem>>, %arg4: memref<1x128xf32, #tpu.memory_space<vmem>>, %arg5: memref<32x128xf32, #tpu.memory_space<vmem>>, %arg6: memref<32x128xf32, #tpu.memory_space<vmem>>, %arg7: memref<1x128xf32, #tpu.memory_space<vmem>>, %arg8: memref<32x16xf32, #tpu.memory_space<vmem>>, %arg9: memref<1x16xf32, #tpu.memory_space<vmem>>, %arg10: memref<16x16xf32, #tpu.memory_space<vmem>>) attributes {dimension_semantics = [], scalar_prefetch = 0 : i64, scratch_operands = 0 : i64, tpu.core_type = #tpu.core_type<tc>} {
    %c0 = arith.constant 0 : index
    %c0_0 = arith.constant 0 : index
    %0 = vector.load %arg2[%c0, %c0_0] : memref<32x128xf32, #tpu.memory_space<vmem>>, vector<32x128xf32>
    %c0_1 = arith.constant 0 : index
    %c0_2 = arith.constant 0 : index
    %1 = vector.load %arg5[%c0_1, %c0_2] : memref<32x128xf32, #tpu.memory_space<vmem>>, vector<32x128xf32>
    %c0_3 = arith.constant 0 : index
    %c0_4 = arith.constant 0 : index
    %2 = vector.load %arg3[%c0_3, %c0_4] : memref<32x128xf32, #tpu.memory_space<vmem>>, vector<32x128xf32>
    %c0_5 = arith.constant 0 : index
    %c0_6 = arith.constant 0 : index
    %3 = vector.load %arg6[%c0_5, %c0_6] : memref<32x128xf32, #tpu.memory_space<vmem>>, vector<32x128xf32>
    %c0_7 = arith.constant 0 : index
    %c0_8 = arith.constant 0 : index
    %4 = vector.load %arg4[%c0_7, %c0_8] : memref<1x128xf32, #tpu.memory_space<vmem>>, vector<1x128xf32>
    %c0_9 = arith.constant 0 : index
    %c0_10 = arith.constant 0 : index
    %5 = vector.load %arg7[%c0_9, %c0_10] : memref<1x128xf32, #tpu.memory_space<vmem>>, vector<1x128xf32>
    %c0_11 = arith.constant 0 : index
    %c0_12 = arith.constant 0 : index
    %6 = vector.load %arg8[%c0_11, %c0_12] : memref<32x16xf32, #tpu.memory_space<vmem>>, vector<32x16xf32>
    %c0_13 = arith.constant 0 : index
    %c0_14 = arith.constant 0 : index
    %7 = vector.load %arg9[%c0_13, %c0_14] : memref<1x16xf32, #tpu.memory_space<vmem>>, vector<1x16xf32>
    %c0_15 = arith.constant 0 : index
    %c0_16 = arith.constant 0 : index
    %8 = memref.load %arg0[%c0_15, %c0_16] : memref<2x8xi32, #tpu.memory_space<smem>>
    %c0_i32 = arith.constant 0 : i32
    %c49_i32 = arith.constant 49 : i32
    %9 = arith.maxsi %c0_i32, %8 : i32
    %10 = arith.minsi %c49_i32, %9 : i32
    %11 = arith.index_cast %10 : i32 to index
    %c0_17 = arith.constant 0 : index
    %12 = vector.load %arg1[%11, %c0_17] : memref<50x32xf32, #tpu.memory_space<vmem>>, vector<1x32xf32>
    %c1 = arith.constant 1 : index
    %c0_18 = arith.constant 0 : index
    %13 = memref.load %arg0[%c1, %c0_18] : memref<2x8xi32, #tpu.memory_space<smem>>
    %c0_i32_19 = arith.constant 0 : i32
    %c49_i32_20 = arith.constant 49 : i32
    %14 = arith.maxsi %c0_i32_19, %13 : i32
    %15 = arith.minsi %c49_i32_20, %14 : i32
    %16 = arith.index_cast %15 : i32 to index
    %c0_21 = arith.constant 0 : index
    %17 = vector.load %arg1[%16, %c0_21] : memref<50x32xf32, #tpu.memory_space<vmem>>, vector<1x32xf32>
    %c0_22 = arith.constant 0 : index
    %c1_23 = arith.constant 1 : index
    %18 = memref.load %arg0[%c0_22, %c1_23] : memref<2x8xi32, #tpu.memory_space<smem>>
    %c0_i32_24 = arith.constant 0 : i32
    %c49_i32_25 = arith.constant 49 : i32
    %19 = arith.maxsi %c0_i32_24, %18 : i32
    %20 = arith.minsi %c49_i32_25, %19 : i32
    %21 = arith.index_cast %20 : i32 to index
    %c0_26 = arith.constant 0 : index
    %22 = vector.load %arg1[%21, %c0_26] : memref<50x32xf32, #tpu.memory_space<vmem>>, vector<1x32xf32>
    %c1_27 = arith.constant 1 : index
    %c1_28 = arith.constant 1 : index
    %23 = memref.load %arg0[%c1_27, %c1_28] : memref<2x8xi32, #tpu.memory_space<smem>>
    %c0_i32_29 = arith.constant 0 : i32
    %c49_i32_30 = arith.constant 49 : i32
    %24 = arith.maxsi %c0_i32_29, %23 : i32
    %25 = arith.minsi %c49_i32_30, %24 : i32
    %26 = arith.index_cast %25 : i32 to index
    %c0_31 = arith.constant 0 : index
    %27 = vector.load %arg1[%26, %c0_31] : memref<50x32xf32, #tpu.memory_space<vmem>>, vector<1x32xf32>
    %c0_32 = arith.constant 0 : index
    %c2 = arith.constant 2 : index
    %28 = memref.load %arg0[%c0_32, %c2] : memref<2x8xi32, #tpu.memory_space<smem>>
    %c0_i32_33 = arith.constant 0 : i32
    %c49_i32_34 = arith.constant 49 : i32
    %29 = arith.maxsi %c0_i32_33, %28 : i32
    %30 = arith.minsi %c49_i32_34, %29 : i32
    %31 = arith.index_cast %30 : i32 to index
    %c0_35 = arith.constant 0 : index
    %32 = vector.load %arg1[%31, %c0_35] : memref<50x32xf32, #tpu.memory_space<vmem>>, vector<1x32xf32>
    %c1_36 = arith.constant 1 : index
    %c2_37 = arith.constant 2 : index
    %33 = memref.load %arg0[%c1_36, %c2_37] : memref<2x8xi32, #tpu.memory_space<smem>>
    %c0_i32_38 = arith.constant 0 : i32
    %c49_i32_39 = arith.constant 49 : i32
    %34 = arith.maxsi %c0_i32_38, %33 : i32
    %35 = arith.minsi %c49_i32_39, %34 : i32
    %36 = arith.index_cast %35 : i32 to index
    %c0_40 = arith.constant 0 : index
    %37 = vector.load %arg1[%36, %c0_40] : memref<50x32xf32, #tpu.memory_space<vmem>>, vector<1x32xf32>
    %c0_41 = arith.constant 0 : index
    %c3 = arith.constant 3 : index
    %38 = memref.load %arg0[%c0_41, %c3] : memref<2x8xi32, #tpu.memory_space<smem>>
    %c0_i32_42 = arith.constant 0 : i32
    %c49_i32_43 = arith.constant 49 : i32
    %39 = arith.maxsi %c0_i32_42, %38 : i32
    %40 = arith.minsi %c49_i32_43, %39 : i32
    %41 = arith.index_cast %40 : i32 to index
    %c0_44 = arith.constant 0 : index
    %42 = vector.load %arg1[%41, %c0_44] : memref<50x32xf32, #tpu.memory_space<vmem>>, vector<1x32xf32>
    %c1_45 = arith.constant 1 : index
    %c3_46 = arith.constant 3 : index
    %43 = memref.load %arg0[%c1_45, %c3_46] : memref<2x8xi32, #tpu.memory_space<smem>>
    %c0_i32_47 = arith.constant 0 : i32
    %c49_i32_48 = arith.constant 49 : i32
    %44 = arith.maxsi %c0_i32_47, %43 : i32
    %45 = arith.minsi %c49_i32_48, %44 : i32
    %46 = arith.index_cast %45 : i32 to index
    %c0_49 = arith.constant 0 : index
    %47 = vector.load %arg1[%46, %c0_49] : memref<50x32xf32, #tpu.memory_space<vmem>>, vector<1x32xf32>
    %c0_50 = arith.constant 0 : index
    %c4 = arith.constant 4 : index
    %48 = memref.load %arg0[%c0_50, %c4] : memref<2x8xi32, #tpu.memory_space<smem>>
    %c0_i32_51 = arith.constant 0 : i32
    %c49_i32_52 = arith.constant 49 : i32
    %49 = arith.maxsi %c0_i32_51, %48 : i32
    %50 = arith.minsi %c49_i32_52, %49 : i32
    %51 = arith.index_cast %50 : i32 to index
    %c0_53 = arith.constant 0 : index
    %52 = vector.load %arg1[%51, %c0_53] : memref<50x32xf32, #tpu.memory_space<vmem>>, vector<1x32xf32>
    %c1_54 = arith.constant 1 : index
    %c4_55 = arith.constant 4 : index
    %53 = memref.load %arg0[%c1_54, %c4_55] : memref<2x8xi32, #tpu.memory_space<smem>>
    %c0_i32_56 = arith.constant 0 : i32
    %c49_i32_57 = arith.constant 49 : i32
    %54 = arith.maxsi %c0_i32_56, %53 : i32
    %55 = arith.minsi %c49_i32_57, %54 : i32
    %56 = arith.index_cast %55 : i32 to index
    %c0_58 = arith.constant 0 : index
    %57 = vector.load %arg1[%56, %c0_58] : memref<50x32xf32, #tpu.memory_space<vmem>>, vector<1x32xf32>
    %c0_59 = arith.constant 0 : index
    %c5 = arith.constant 5 : index
    %58 = memref.load %arg0[%c0_59, %c5] : memref<2x8xi32, #tpu.memory_space<smem>>
    %c0_i32_60 = arith.constant 0 : i32
    %c49_i32_61 = arith.constant 49 : i32
    %59 = arith.maxsi %c0_i32_60, %58 : i32
    %60 = arith.minsi %c49_i32_61, %59 : i32
    %61 = arith.index_cast %60 : i32 to index
    %c0_62 = arith.constant 0 : index
    %62 = vector.load %arg1[%61, %c0_62] : memref<50x32xf32, #tpu.memory_space<vmem>>, vector<1x32xf32>
    %c1_63 = arith.constant 1 : index
    %c5_64 = arith.constant 5 : index
    %63 = memref.load %arg0[%c1_63, %c5_64] : memref<2x8xi32, #tpu.memory_space<smem>>
    %c0_i32_65 = arith.constant 0 : i32
    %c49_i32_66 = arith.constant 49 : i32
    %64 = arith.maxsi %c0_i32_65, %63 : i32
    %65 = arith.minsi %c49_i32_66, %64 : i32
    %66 = arith.index_cast %65 : i32 to index
    %c0_67 = arith.constant 0 : index
    %67 = vector.load %arg1[%66, %c0_67] : memref<50x32xf32, #tpu.memory_space<vmem>>, vector<1x32xf32>
    %c0_68 = arith.constant 0 : index
    %c6 = arith.constant 6 : index
    %68 = memref.load %arg0[%c0_68, %c6] : memref<2x8xi32, #tpu.memory_space<smem>>
    %c0_i32_69 = arith.constant 0 : i32
    %c49_i32_70 = arith.constant 49 : i32
    %69 = arith.maxsi %c0_i32_69, %68 : i32
    %70 = arith.minsi %c49_i32_70, %69 : i32
    %71 = arith.index_cast %70 : i32 to index
    %c0_71 = arith.constant 0 : index
    %72 = vector.load %arg1[%71, %c0_71] : memref<50x32xf32, #tpu.memory_space<vmem>>, vector<1x32xf32>
    %c1_72 = arith.constant 1 : index
    %c6_73 = arith.constant 6 : index
    %73 = memref.load %arg0[%c1_72, %c6_73] : memref<2x8xi32, #tpu.memory_space<smem>>
    %c0_i32_74 = arith.constant 0 : i32
    %c49_i32_75 = arith.constant 49 : i32
    %74 = arith.maxsi %c0_i32_74, %73 : i32
    %75 = arith.minsi %c49_i32_75, %74 : i32
    %76 = arith.index_cast %75 : i32 to index
    %c0_76 = arith.constant 0 : index
    %77 = vector.load %arg1[%76, %c0_76] : memref<50x32xf32, #tpu.memory_space<vmem>>, vector<1x32xf32>
    %c0_77 = arith.constant 0 : index
    %c7 = arith.constant 7 : index
    %78 = memref.load %arg0[%c0_77, %c7] : memref<2x8xi32, #tpu.memory_space<smem>>
    %c0_i32_78 = arith.constant 0 : i32
    %c49_i32_79 = arith.constant 49 : i32
    %79 = arith.maxsi %c0_i32_78, %78 : i32
    %80 = arith.minsi %c49_i32_79, %79 : i32
    %81 = arith.index_cast %80 : i32 to index
    %c0_80 = arith.constant 0 : index
    %82 = vector.load %arg1[%81, %c0_80] : memref<50x32xf32, #tpu.memory_space<vmem>>, vector<1x32xf32>
    %c1_81 = arith.constant 1 : index
    %c7_82 = arith.constant 7 : index
    %83 = memref.load %arg0[%c1_81, %c7_82] : memref<2x8xi32, #tpu.memory_space<smem>>
    %c0_i32_83 = arith.constant 0 : i32
    %c49_i32_84 = arith.constant 49 : i32
    %84 = arith.maxsi %c0_i32_83, %83 : i32
    %85 = arith.minsi %c49_i32_84, %84 : i32
    %86 = arith.index_cast %85 : i32 to index
    %c0_85 = arith.constant 0 : index
    %87 = vector.load %arg1[%86, %c0_85] : memref<50x32xf32, #tpu.memory_space<vmem>>, vector<1x32xf32>
    %88 = tpu.concatenate %12, %17, %22, %27, %32, %37, %42, %47, %52, %57, %62, %67, %72, %77, %82, %87 in 0 : vector<1x32xf32>, vector<1x32xf32>, vector<1x32xf32>, vector<1x32xf32>, vector<1x32xf32>, vector<1x32xf32>, vector<1x32xf32>, vector<1x32xf32>, vector<1x32xf32>, vector<1x32xf32>, vector<1x32xf32>, vector<1x32xf32>, vector<1x32xf32>, vector<1x32xf32>, vector<1x32xf32>, vector<1x32xf32> -> vector<16x32xf32>
    %cst = arith.constant dense<0.000000e+00> : vector<16x128xf32>
    %89 = tpu.matmul %88, %0, %cst {dimension_numbers = #tpu.dot_dimension_numbers<[1], [0], [0], [1], [0, 0, 1, 1], [], []>} : vector<16x32xf32>, vector<32x128xf32>, vector<16x128xf32> -> vector<16x128xf32>
    %90 = vector.broadcast %4 : vector<1x128xf32> to vector<16x128xf32>
    %91 = arith.addf %89, %90 : vector<16x128xf32>
    %92 = tpu.iota {dimensions = array<i32: 1>} : vector<2x128xi32>
    %c96_i32 = arith.constant 96 : i32
    %93 = vector.broadcast %c96_i32 : i32 to vector<2x128xi32>
    %94 = arith.cmpi sge, %92, %93 : vector<2x128xi32>
    %cst_86 = arith.constant 0.000000e+00 : f32
    %95 = vector.broadcast %cst_86 : f32 to vector<2x32xf32>
    %cst_87 = arith.constant 0.000000e+00 : f32
    %96 = vector.broadcast %cst_87 : f32 to vector<2x32xf32>
    %cst_88 = arith.constant 0.000000e+00 : f32
    %97 = vector.broadcast %cst_88 : f32 to vector<2x32xf32>
    %cst_89 = arith.constant 0.000000e+00 : f32
    %98 = vector.broadcast %cst_89 : f32 to vector<2x32xf32>
    %cst_90 = arith.constant dense<0.000000e+00> : vector<2x128xf32>
    %99 = tpu.matmul %95, %2, %cst_90 {dimension_numbers = #tpu.dot_dimension_numbers<[1], [0], [0], [1], [0, 0, 1, 1], [], []>} : vector<2x32xf32>, vector<32x128xf32>, vector<2x128xf32> -> vector<2x128xf32>
    %100 = vector.extract_strided_slice %91 {offsets = [0, 0], sizes = [2, 128], strides = [1, 1]} : vector<16x128xf32> to vector<2x128xf32>
    %101 = arith.addf %100, %99 : vector<2x128xf32>
    %102 = math.tanh %101 : vector<2x128xf32>
    %cst_91 = arith.constant 5.000000e-01 : f32
    %103 = vector.broadcast %cst_91 : f32 to vector<2x128xf32>
    %104 = arith.mulf %103, %102 : vector<2x128xf32>
    %cst_92 = arith.constant 5.000000e-01 : f32
    %105 = vector.broadcast %cst_92 : f32 to vector<2x128xf32>
    %106 = arith.addf %104, %105 : vector<2x128xf32>
    %107 = arith.select %94, %102, %106 : vector<2x128xi1>, vector<2x128xf32>
    %108 = vector.extract_strided_slice %107 {offsets = [0, 0], sizes = [2, 32], strides = [1, 1]} : vector<2x128xf32> to vector<2x32xf32>
    %109 = vector.extract_strided_slice %107 {offsets = [0, 32], sizes = [2, 32], strides = [1, 1]} : vector<2x128xf32> to vector<2x32xf32>
    %110 = vector.extract_strided_slice %107 {offsets = [0, 64], sizes = [2, 32], strides = [1, 1]} : vector<2x128xf32> to vector<2x32xf32>
    %111 = vector.extract_strided_slice %107 {offsets = [0, 96], sizes = [2, 32], strides = [1, 1]} : vector<2x128xf32> to vector<2x32xf32>
    %112 = arith.mulf %109, %97 : vector<2x32xf32>
    %113 = arith.mulf %108, %111 : vector<2x32xf32>
    %114 = arith.addf %112, %113 : vector<2x32xf32>
    %115 = math.tanh %114 : vector<2x32xf32>
    %116 = arith.mulf %110, %115 : vector<2x32xf32>
    %cst_93 = arith.constant dense<0.000000e+00> : vector<2x128xf32>
    %117 = tpu.matmul %96, %3, %cst_93 {dimension_numbers = #tpu.dot_dimension_numbers<[1], [0], [0], [1], [0, 0, 1, 1], [], []>} : vector<2x32xf32>, vector<32x128xf32>, vector<2x128xf32> -> vector<2x128xf32>
    %cst_94 = arith.constant dense<0.000000e+00> : vector<2x128xf32>
    %118 = tpu.matmul %116, %1, %cst_94 {dimension_numbers = #tpu.dot_dimension_numbers<[1], [0], [0], [1], [0, 0, 1, 1], [], []>} : vector<2x32xf32>, vector<32x128xf32>, vector<2x128xf32> -> vector<2x128xf32>
    %119 = arith.addf %118, %117 : vector<2x128xf32>
    %120 = vector.broadcast %5 : vector<1x128xf32> to vector<2x128xf32>
    %121 = arith.addf %119, %120 : vector<2x128xf32>
    %122 = math.tanh %121 : vector<2x128xf32>
    %cst_95 = arith.constant 5.000000e-01 : f32
    %123 = vector.broadcast %cst_95 : f32 to vector<2x128xf32>
    %124 = arith.mulf %123, %122 : vector<2x128xf32>
    %cst_96 = arith.constant 5.000000e-01 : f32
    %125 = vector.broadcast %cst_96 : f32 to vector<2x128xf32>
    %126 = arith.addf %124, %125 : vector<2x128xf32>
    %127 = arith.select %94, %122, %126 : vector<2x128xi1>, vector<2x128xf32>
    %128 = vector.extract_strided_slice %127 {offsets = [0, 0], sizes = [2, 32], strides = [1, 1]} : vector<2x128xf32> to vector<2x32xf32>
    %129 = vector.extract_strided_slice %127 {offsets = [0, 32], sizes = [2, 32], strides = [1, 1]} : vector<2x128xf32> to vector<2x32xf32>
    %130 = vector.extract_strided_slice %127 {offsets = [0, 64], sizes = [2, 32], strides = [1, 1]} : vector<2x128xf32> to vector<2x32xf32>
    %131 = vector.extract_strided_slice %127 {offsets = [0, 96], sizes = [2, 32], strides = [1, 1]} : vector<2x128xf32> to vector<2x32xf32>
    %132 = arith.mulf %129, %98 : vector<2x32xf32>
    %133 = arith.mulf %128, %131 : vector<2x32xf32>
    %134 = arith.addf %132, %133 : vector<2x32xf32>
    %135 = math.tanh %134 : vector<2x32xf32>
    %136 = arith.mulf %130, %135 : vector<2x32xf32>
    %cst_97 = arith.constant dense<0.000000e+00> : vector<2x128xf32>
    %137 = tpu.matmul %116, %2, %cst_97 {dimension_numbers = #tpu.dot_dimension_numbers<[1], [0], [0], [1], [0, 0, 1, 1], [], []>} : vector<2x32xf32>, vector<32x128xf32>, vector<2x128xf32> -> vector<2x128xf32>
    %138 = vector.extract_strided_slice %91 {offsets = [2, 0], sizes = [2, 128], strides = [1, 1]} : vector<16x128xf32> to vector<2x128xf32>
    %139 = arith.addf %138, %137 : vector<2x128xf32>
    %140 = math.tanh %139 : vector<2x128xf32>
    %cst_98 = arith.constant 5.000000e-01 : f32
    %141 = vector.broadcast %cst_98 : f32 to vector<2x128xf32>
    %142 = arith.mulf %141, %140 : vector<2x128xf32>
    %cst_99 = arith.constant 5.000000e-01 : f32
    %143 = vector.broadcast %cst_99 : f32 to vector<2x128xf32>
    %144 = arith.addf %142, %143 : vector<2x128xf32>
    %145 = arith.select %94, %140, %144 : vector<2x128xi1>, vector<2x128xf32>
    %146 = vector.extract_strided_slice %145 {offsets = [0, 0], sizes = [2, 32], strides = [1, 1]} : vector<2x128xf32> to vector<2x32xf32>
    %147 = vector.extract_strided_slice %145 {offsets = [0, 32], sizes = [2, 32], strides = [1, 1]} : vector<2x128xf32> to vector<2x32xf32>
    %148 = vector.extract_strided_slice %145 {offsets = [0, 64], sizes = [2, 32], strides = [1, 1]} : vector<2x128xf32> to vector<2x32xf32>
    %149 = vector.extract_strided_slice %145 {offsets = [0, 96], sizes = [2, 32], strides = [1, 1]} : vector<2x128xf32> to vector<2x32xf32>
    %150 = arith.mulf %147, %114 : vector<2x32xf32>
    %151 = arith.mulf %146, %149 : vector<2x32xf32>
    %152 = arith.addf %150, %151 : vector<2x32xf32>
    %153 = math.tanh %152 : vector<2x32xf32>
    %154 = arith.mulf %148, %153 : vector<2x32xf32>
    %cst_100 = arith.constant dense<0.000000e+00> : vector<2x128xf32>
    %155 = tpu.matmul %136, %3, %cst_100 {dimension_numbers = #tpu.dot_dimension_numbers<[1], [0], [0], [1], [0, 0, 1, 1], [], []>} : vector<2x32xf32>, vector<32x128xf32>, vector<2x128xf32> -> vector<2x128xf32>
    %cst_101 = arith.constant dense<0.000000e+00> : vector<2x128xf32>
    %156 = tpu.matmul %154, %1, %cst_101 {dimension_numbers = #tpu.dot_dimension_numbers<[1], [0], [0], [1], [0, 0, 1, 1], [], []>} : vector<2x32xf32>, vector<32x128xf32>, vector<2x128xf32> -> vector<2x128xf32>
    %157 = arith.addf %156, %155 : vector<2x128xf32>
    %158 = vector.broadcast %5 : vector<1x128xf32> to vector<2x128xf32>
    %159 = arith.addf %157, %158 : vector<2x128xf32>
    %160 = math.tanh %159 : vector<2x128xf32>
    %cst_102 = arith.constant 5.000000e-01 : f32
    %161 = vector.broadcast %cst_102 : f32 to vector<2x128xf32>
    %162 = arith.mulf %161, %160 : vector<2x128xf32>
    %cst_103 = arith.constant 5.000000e-01 : f32
    %163 = vector.broadcast %cst_103 : f32 to vector<2x128xf32>
    %164 = arith.addf %162, %163 : vector<2x128xf32>
    %165 = arith.select %94, %160, %164 : vector<2x128xi1>, vector<2x128xf32>
    %166 = vector.extract_strided_slice %165 {offsets = [0, 0], sizes = [2, 32], strides = [1, 1]} : vector<2x128xf32> to vector<2x32xf32>
    %167 = vector.extract_strided_slice %165 {offsets = [0, 32], sizes = [2, 32], strides = [1, 1]} : vector<2x128xf32> to vector<2x32xf32>
    %168 = vector.extract_strided_slice %165 {offsets = [0, 64], sizes = [2, 32], strides = [1, 1]} : vector<2x128xf32> to vector<2x32xf32>
    %169 = vector.extract_strided_slice %165 {offsets = [0, 96], sizes = [2, 32], strides = [1, 1]} : vector<2x128xf32> to vector<2x32xf32>
    %170 = arith.mulf %167, %134 : vector<2x32xf32>
    %171 = arith.mulf %166, %169 : vector<2x32xf32>
    %172 = arith.addf %170, %171 : vector<2x32xf32>
    %173 = math.tanh %172 : vector<2x32xf32>
    %174 = arith.mulf %168, %173 : vector<2x32xf32>
    %cst_104 = arith.constant dense<0.000000e+00> : vector<2x128xf32>
    %175 = tpu.matmul %154, %2, %cst_104 {dimension_numbers = #tpu.dot_dimension_numbers<[1], [0], [0], [1], [0, 0, 1, 1], [], []>} : vector<2x32xf32>, vector<32x128xf32>, vector<2x128xf32> -> vector<2x128xf32>
    %176 = vector.extract_strided_slice %91 {offsets = [4, 0], sizes = [2, 128], strides = [1, 1]} : vector<16x128xf32> to vector<2x128xf32>
    %177 = arith.addf %176, %175 : vector<2x128xf32>
    %178 = math.tanh %177 : vector<2x128xf32>
    %cst_105 = arith.constant 5.000000e-01 : f32
    %179 = vector.broadcast %cst_105 : f32 to vector<2x128xf32>
    %180 = arith.mulf %179, %178 : vector<2x128xf32>
    %cst_106 = arith.constant 5.000000e-01 : f32
    %181 = vector.broadcast %cst_106 : f32 to vector<2x128xf32>
    %182 = arith.addf %180, %181 : vector<2x128xf32>
    %183 = arith.select %94, %178, %182 : vector<2x128xi1>, vector<2x128xf32>
    %184 = vector.extract_strided_slice %183 {offsets = [0, 0], sizes = [2, 32], strides = [1, 1]} : vector<2x128xf32> to vector<2x32xf32>
    %185 = vector.extract_strided_slice %183 {offsets = [0, 32], sizes = [2, 32], strides = [1, 1]} : vector<2x128xf32> to vector<2x32xf32>
    %186 = vector.extract_strided_slice %183 {offsets = [0, 64], sizes = [2, 32], strides = [1, 1]} : vector<2x128xf32> to vector<2x32xf32>
    %187 = vector.extract_strided_slice %183 {offsets = [0, 96], sizes = [2, 32], strides = [1, 1]} : vector<2x128xf32> to vector<2x32xf32>
    %188 = arith.mulf %185, %152 : vector<2x32xf32>
    %189 = arith.mulf %184, %187 : vector<2x32xf32>
    %190 = arith.addf %188, %189 : vector<2x32xf32>
    %191 = math.tanh %190 : vector<2x32xf32>
    %192 = arith.mulf %186, %191 : vector<2x32xf32>
    %cst_107 = arith.constant dense<0.000000e+00> : vector<2x128xf32>
    %193 = tpu.matmul %174, %3, %cst_107 {dimension_numbers = #tpu.dot_dimension_numbers<[1], [0], [0], [1], [0, 0, 1, 1], [], []>} : vector<2x32xf32>, vector<32x128xf32>, vector<2x128xf32> -> vector<2x128xf32>
    %cst_108 = arith.constant dense<0.000000e+00> : vector<2x128xf32>
    %194 = tpu.matmul %192, %1, %cst_108 {dimension_numbers = #tpu.dot_dimension_numbers<[1], [0], [0], [1], [0, 0, 1, 1], [], []>} : vector<2x32xf32>, vector<32x128xf32>, vector<2x128xf32> -> vector<2x128xf32>
    %195 = arith.addf %194, %193 : vector<2x128xf32>
    %196 = vector.broadcast %5 : vector<1x128xf32> to vector<2x128xf32>
    %197 = arith.addf %195, %196 : vector<2x128xf32>
    %198 = math.tanh %197 : vector<2x128xf32>
    %cst_109 = arith.constant 5.000000e-01 : f32
    %199 = vector.broadcast %cst_109 : f32 to vector<2x128xf32>
    %200 = arith.mulf %199, %198 : vector<2x128xf32>
    %cst_110 = arith.constant 5.000000e-01 : f32
    %201 = vector.broadcast %cst_110 : f32 to vector<2x128xf32>
    %202 = arith.addf %200, %201 : vector<2x128xf32>
    %203 = arith.select %94, %198, %202 : vector<2x128xi1>, vector<2x128xf32>
    %204 = vector.extract_strided_slice %203 {offsets = [0, 0], sizes = [2, 32], strides = [1, 1]} : vector<2x128xf32> to vector<2x32xf32>
    %205 = vector.extract_strided_slice %203 {offsets = [0, 32], sizes = [2, 32], strides = [1, 1]} : vector<2x128xf32> to vector<2x32xf32>
    %206 = vector.extract_strided_slice %203 {offsets = [0, 64], sizes = [2, 32], strides = [1, 1]} : vector<2x128xf32> to vector<2x32xf32>
    %207 = vector.extract_strided_slice %203 {offsets = [0, 96], sizes = [2, 32], strides = [1, 1]} : vector<2x128xf32> to vector<2x32xf32>
    %208 = arith.mulf %205, %172 : vector<2x32xf32>
    %209 = arith.mulf %204, %207 : vector<2x32xf32>
    %210 = arith.addf %208, %209 : vector<2x32xf32>
    %211 = math.tanh %210 : vector<2x32xf32>
    %212 = arith.mulf %206, %211 : vector<2x32xf32>
    %cst_111 = arith.constant dense<0.000000e+00> : vector<2x128xf32>
    %213 = tpu.matmul %192, %2, %cst_111 {dimension_numbers = #tpu.dot_dimension_numbers<[1], [0], [0], [1], [0, 0, 1, 1], [], []>} : vector<2x32xf32>, vector<32x128xf32>, vector<2x128xf32> -> vector<2x128xf32>
    %214 = vector.extract_strided_slice %91 {offsets = [6, 0], sizes = [2, 128], strides = [1, 1]} : vector<16x128xf32> to vector<2x128xf32>
    %215 = arith.addf %214, %213 : vector<2x128xf32>
    %216 = math.tanh %215 : vector<2x128xf32>
    %cst_112 = arith.constant 5.000000e-01 : f32
    %217 = vector.broadcast %cst_112 : f32 to vector<2x128xf32>
    %218 = arith.mulf %217, %216 : vector<2x128xf32>
    %cst_113 = arith.constant 5.000000e-01 : f32
    %219 = vector.broadcast %cst_113 : f32 to vector<2x128xf32>
    %220 = arith.addf %218, %219 : vector<2x128xf32>
    %221 = arith.select %94, %216, %220 : vector<2x128xi1>, vector<2x128xf32>
    %222 = vector.extract_strided_slice %221 {offsets = [0, 0], sizes = [2, 32], strides = [1, 1]} : vector<2x128xf32> to vector<2x32xf32>
    %223 = vector.extract_strided_slice %221 {offsets = [0, 32], sizes = [2, 32], strides = [1, 1]} : vector<2x128xf32> to vector<2x32xf32>
    %224 = vector.extract_strided_slice %221 {offsets = [0, 64], sizes = [2, 32], strides = [1, 1]} : vector<2x128xf32> to vector<2x32xf32>
    %225 = vector.extract_strided_slice %221 {offsets = [0, 96], sizes = [2, 32], strides = [1, 1]} : vector<2x128xf32> to vector<2x32xf32>
    %226 = arith.mulf %223, %190 : vector<2x32xf32>
    %227 = arith.mulf %222, %225 : vector<2x32xf32>
    %228 = arith.addf %226, %227 : vector<2x32xf32>
    %229 = math.tanh %228 : vector<2x32xf32>
    %230 = arith.mulf %224, %229 : vector<2x32xf32>
    %cst_114 = arith.constant dense<0.000000e+00> : vector<2x128xf32>
    %231 = tpu.matmul %212, %3, %cst_114 {dimension_numbers = #tpu.dot_dimension_numbers<[1], [0], [0], [1], [0, 0, 1, 1], [], []>} : vector<2x32xf32>, vector<32x128xf32>, vector<2x128xf32> -> vector<2x128xf32>
    %cst_115 = arith.constant dense<0.000000e+00> : vector<2x128xf32>
    %232 = tpu.matmul %230, %1, %cst_115 {dimension_numbers = #tpu.dot_dimension_numbers<[1], [0], [0], [1], [0, 0, 1, 1], [], []>} : vector<2x32xf32>, vector<32x128xf32>, vector<2x128xf32> -> vector<2x128xf32>
    %233 = arith.addf %232, %231 : vector<2x128xf32>
    %234 = vector.broadcast %5 : vector<1x128xf32> to vector<2x128xf32>
    %235 = arith.addf %233, %234 : vector<2x128xf32>
    %236 = math.tanh %235 : vector<2x128xf32>
    %cst_116 = arith.constant 5.000000e-01 : f32
    %237 = vector.broadcast %cst_116 : f32 to vector<2x128xf32>
    %238 = arith.mulf %237, %236 : vector<2x128xf32>
    %cst_117 = arith.constant 5.000000e-01 : f32
    %239 = vector.broadcast %cst_117 : f32 to vector<2x128xf32>
    %240 = arith.addf %238, %239 : vector<2x128xf32>
    %241 = arith.select %94, %236, %240 : vector<2x128xi1>, vector<2x128xf32>
    %242 = vector.extract_strided_slice %241 {offsets = [0, 0], sizes = [2, 32], strides = [1, 1]} : vector<2x128xf32> to vector<2x32xf32>
    %243 = vector.extract_strided_slice %241 {offsets = [0, 32], sizes = [2, 32], strides = [1, 1]} : vector<2x128xf32> to vector<2x32xf32>
    %244 = vector.extract_strided_slice %241 {offsets = [0, 64], sizes = [2, 32], strides = [1, 1]} : vector<2x128xf32> to vector<2x32xf32>
    %245 = vector.extract_strided_slice %241 {offsets = [0, 96], sizes = [2, 32], strides = [1, 1]} : vector<2x128xf32> to vector<2x32xf32>
    %246 = arith.mulf %243, %210 : vector<2x32xf32>
    %247 = arith.mulf %242, %245 : vector<2x32xf32>
    %248 = arith.addf %246, %247 : vector<2x32xf32>
    %249 = math.tanh %248 : vector<2x32xf32>
    %250 = arith.mulf %244, %249 : vector<2x32xf32>
    %cst_118 = arith.constant dense<0.000000e+00> : vector<2x128xf32>
    %251 = tpu.matmul %230, %2, %cst_118 {dimension_numbers = #tpu.dot_dimension_numbers<[1], [0], [0], [1], [0, 0, 1, 1], [], []>} : vector<2x32xf32>, vector<32x128xf32>, vector<2x128xf32> -> vector<2x128xf32>
    %252 = vector.extract_strided_slice %91 {offsets = [8, 0], sizes = [2, 128], strides = [1, 1]} : vector<16x128xf32> to vector<2x128xf32>
    %253 = arith.addf %252, %251 : vector<2x128xf32>
    %254 = math.tanh %253 : vector<2x128xf32>
    %cst_119 = arith.constant 5.000000e-01 : f32
    %255 = vector.broadcast %cst_119 : f32 to vector<2x128xf32>
    %256 = arith.mulf %255, %254 : vector<2x128xf32>
    %cst_120 = arith.constant 5.000000e-01 : f32
    %257 = vector.broadcast %cst_120 : f32 to vector<2x128xf32>
    %258 = arith.addf %256, %257 : vector<2x128xf32>
    %259 = arith.select %94, %254, %258 : vector<2x128xi1>, vector<2x128xf32>
    %260 = vector.extract_strided_slice %259 {offsets = [0, 0], sizes = [2, 32], strides = [1, 1]} : vector<2x128xf32> to vector<2x32xf32>
    %261 = vector.extract_strided_slice %259 {offsets = [0, 32], sizes = [2, 32], strides = [1, 1]} : vector<2x128xf32> to vector<2x32xf32>
    %262 = vector.extract_strided_slice %259 {offsets = [0, 64], sizes = [2, 32], strides = [1, 1]} : vector<2x128xf32> to vector<2x32xf32>
    %263 = vector.extract_strided_slice %259 {offsets = [0, 96], sizes = [2, 32], strides = [1, 1]} : vector<2x128xf32> to vector<2x32xf32>
    %264 = arith.mulf %261, %228 : vector<2x32xf32>
    %265 = arith.mulf %260, %263 : vector<2x32xf32>
    %266 = arith.addf %264, %265 : vector<2x32xf32>
    %267 = math.tanh %266 : vector<2x32xf32>
    %268 = arith.mulf %262, %267 : vector<2x32xf32>
    %cst_121 = arith.constant dense<0.000000e+00> : vector<2x128xf32>
    %269 = tpu.matmul %250, %3, %cst_121 {dimension_numbers = #tpu.dot_dimension_numbers<[1], [0], [0], [1], [0, 0, 1, 1], [], []>} : vector<2x32xf32>, vector<32x128xf32>, vector<2x128xf32> -> vector<2x128xf32>
    %cst_122 = arith.constant dense<0.000000e+00> : vector<2x128xf32>
    %270 = tpu.matmul %268, %1, %cst_122 {dimension_numbers = #tpu.dot_dimension_numbers<[1], [0], [0], [1], [0, 0, 1, 1], [], []>} : vector<2x32xf32>, vector<32x128xf32>, vector<2x128xf32> -> vector<2x128xf32>
    %271 = arith.addf %270, %269 : vector<2x128xf32>
    %272 = vector.broadcast %5 : vector<1x128xf32> to vector<2x128xf32>
    %273 = arith.addf %271, %272 : vector<2x128xf32>
    %274 = math.tanh %273 : vector<2x128xf32>
    %cst_123 = arith.constant 5.000000e-01 : f32
    %275 = vector.broadcast %cst_123 : f32 to vector<2x128xf32>
    %276 = arith.mulf %275, %274 : vector<2x128xf32>
    %cst_124 = arith.constant 5.000000e-01 : f32
    %277 = vector.broadcast %cst_124 : f32 to vector<2x128xf32>
    %278 = arith.addf %276, %277 : vector<2x128xf32>
    %279 = arith.select %94, %274, %278 : vector<2x128xi1>, vector<2x128xf32>
    %280 = vector.extract_strided_slice %279 {offsets = [0, 0], sizes = [2, 32], strides = [1, 1]} : vector<2x128xf32> to vector<2x32xf32>
    %281 = vector.extract_strided_slice %279 {offsets = [0, 32], sizes = [2, 32], strides = [1, 1]} : vector<2x128xf32> to vector<2x32xf32>
    %282 = vector.extract_strided_slice %279 {offsets = [0, 64], sizes = [2, 32], strides = [1, 1]} : vector<2x128xf32> to vector<2x32xf32>
    %283 = vector.extract_strided_slice %279 {offsets = [0, 96], sizes = [2, 32], strides = [1, 1]} : vector<2x128xf32> to vector<2x32xf32>
    %284 = arith.mulf %281, %248 : vector<2x32xf32>
    %285 = arith.mulf %280, %283 : vector<2x32xf32>
    %286 = arith.addf %284, %285 : vector<2x32xf32>
    %287 = math.tanh %286 : vector<2x32xf32>
    %288 = arith.mulf %282, %287 : vector<2x32xf32>
    %cst_125 = arith.constant dense<0.000000e+00> : vector<2x128xf32>
    %289 = tpu.matmul %268, %2, %cst_125 {dimension_numbers = #tpu.dot_dimension_numbers<[1], [0], [0], [1], [0, 0, 1, 1], [], []>} : vector<2x32xf32>, vector<32x128xf32>, vector<2x128xf32> -> vector<2x128xf32>
    %290 = vector.extract_strided_slice %91 {offsets = [10, 0], sizes = [2, 128], strides = [1, 1]} : vector<16x128xf32> to vector<2x128xf32>
    %291 = arith.addf %290, %289 : vector<2x128xf32>
    %292 = math.tanh %291 : vector<2x128xf32>
    %cst_126 = arith.constant 5.000000e-01 : f32
    %293 = vector.broadcast %cst_126 : f32 to vector<2x128xf32>
    %294 = arith.mulf %293, %292 : vector<2x128xf32>
    %cst_127 = arith.constant 5.000000e-01 : f32
    %295 = vector.broadcast %cst_127 : f32 to vector<2x128xf32>
    %296 = arith.addf %294, %295 : vector<2x128xf32>
    %297 = arith.select %94, %292, %296 : vector<2x128xi1>, vector<2x128xf32>
    %298 = vector.extract_strided_slice %297 {offsets = [0, 0], sizes = [2, 32], strides = [1, 1]} : vector<2x128xf32> to vector<2x32xf32>
    %299 = vector.extract_strided_slice %297 {offsets = [0, 32], sizes = [2, 32], strides = [1, 1]} : vector<2x128xf32> to vector<2x32xf32>
    %300 = vector.extract_strided_slice %297 {offsets = [0, 64], sizes = [2, 32], strides = [1, 1]} : vector<2x128xf32> to vector<2x32xf32>
    %301 = vector.extract_strided_slice %297 {offsets = [0, 96], sizes = [2, 32], strides = [1, 1]} : vector<2x128xf32> to vector<2x32xf32>
    %302 = arith.mulf %299, %266 : vector<2x32xf32>
    %303 = arith.mulf %298, %301 : vector<2x32xf32>
    %304 = arith.addf %302, %303 : vector<2x32xf32>
    %305 = math.tanh %304 : vector<2x32xf32>
    %306 = arith.mulf %300, %305 : vector<2x32xf32>
    %cst_128 = arith.constant dense<0.000000e+00> : vector<2x128xf32>
    %307 = tpu.matmul %288, %3, %cst_128 {dimension_numbers = #tpu.dot_dimension_numbers<[1], [0], [0], [1], [0, 0, 1, 1], [], []>} : vector<2x32xf32>, vector<32x128xf32>, vector<2x128xf32> -> vector<2x128xf32>
    %cst_129 = arith.constant dense<0.000000e+00> : vector<2x128xf32>
    %308 = tpu.matmul %306, %1, %cst_129 {dimension_numbers = #tpu.dot_dimension_numbers<[1], [0], [0], [1], [0, 0, 1, 1], [], []>} : vector<2x32xf32>, vector<32x128xf32>, vector<2x128xf32> -> vector<2x128xf32>
    %309 = arith.addf %308, %307 : vector<2x128xf32>
    %310 = vector.broadcast %5 : vector<1x128xf32> to vector<2x128xf32>
    %311 = arith.addf %309, %310 : vector<2x128xf32>
    %312 = math.tanh %311 : vector<2x128xf32>
    %cst_130 = arith.constant 5.000000e-01 : f32
    %313 = vector.broadcast %cst_130 : f32 to vector<2x128xf32>
    %314 = arith.mulf %313, %312 : vector<2x128xf32>
    %cst_131 = arith.constant 5.000000e-01 : f32
    %315 = vector.broadcast %cst_131 : f32 to vector<2x128xf32>
    %316 = arith.addf %314, %315 : vector<2x128xf32>
    %317 = arith.select %94, %312, %316 : vector<2x128xi1>, vector<2x128xf32>
    %318 = vector.extract_strided_slice %317 {offsets = [0, 0], sizes = [2, 32], strides = [1, 1]} : vector<2x128xf32> to vector<2x32xf32>
    %319 = vector.extract_strided_slice %317 {offsets = [0, 32], sizes = [2, 32], strides = [1, 1]} : vector<2x128xf32> to vector<2x32xf32>
    %320 = vector.extract_strided_slice %317 {offsets = [0, 64], sizes = [2, 32], strides = [1, 1]} : vector<2x128xf32> to vector<2x32xf32>
    %321 = vector.extract_strided_slice %317 {offsets = [0, 96], sizes = [2, 32], strides = [1, 1]} : vector<2x128xf32> to vector<2x32xf32>
    %322 = arith.mulf %319, %286 : vector<2x32xf32>
    %323 = arith.mulf %318, %321 : vector<2x32xf32>
    %324 = arith.addf %322, %323 : vector<2x32xf32>
    %325 = math.tanh %324 : vector<2x32xf32>
    %326 = arith.mulf %320, %325 : vector<2x32xf32>
    %cst_132 = arith.constant dense<0.000000e+00> : vector<2x128xf32>
    %327 = tpu.matmul %306, %2, %cst_132 {dimension_numbers = #tpu.dot_dimension_numbers<[1], [0], [0], [1], [0, 0, 1, 1], [], []>} : vector<2x32xf32>, vector<32x128xf32>, vector<2x128xf32> -> vector<2x128xf32>
    %328 = vector.extract_strided_slice %91 {offsets = [12, 0], sizes = [2, 128], strides = [1, 1]} : vector<16x128xf32> to vector<2x128xf32>
    %329 = arith.addf %328, %327 : vector<2x128xf32>
    %330 = math.tanh %329 : vector<2x128xf32>
    %cst_133 = arith.constant 5.000000e-01 : f32
    %331 = vector.broadcast %cst_133 : f32 to vector<2x128xf32>
    %332 = arith.mulf %331, %330 : vector<2x128xf32>
    %cst_134 = arith.constant 5.000000e-01 : f32
    %333 = vector.broadcast %cst_134 : f32 to vector<2x128xf32>
    %334 = arith.addf %332, %333 : vector<2x128xf32>
    %335 = arith.select %94, %330, %334 : vector<2x128xi1>, vector<2x128xf32>
    %336 = vector.extract_strided_slice %335 {offsets = [0, 0], sizes = [2, 32], strides = [1, 1]} : vector<2x128xf32> to vector<2x32xf32>
    %337 = vector.extract_strided_slice %335 {offsets = [0, 32], sizes = [2, 32], strides = [1, 1]} : vector<2x128xf32> to vector<2x32xf32>
    %338 = vector.extract_strided_slice %335 {offsets = [0, 64], sizes = [2, 32], strides = [1, 1]} : vector<2x128xf32> to vector<2x32xf32>
    %339 = vector.extract_strided_slice %335 {offsets = [0, 96], sizes = [2, 32], strides = [1, 1]} : vector<2x128xf32> to vector<2x32xf32>
    %340 = arith.mulf %337, %304 : vector<2x32xf32>
    %341 = arith.mulf %336, %339 : vector<2x32xf32>
    %342 = arith.addf %340, %341 : vector<2x32xf32>
    %343 = math.tanh %342 : vector<2x32xf32>
    %344 = arith.mulf %338, %343 : vector<2x32xf32>
    %cst_135 = arith.constant dense<0.000000e+00> : vector<2x128xf32>
    %345 = tpu.matmul %326, %3, %cst_135 {dimension_numbers = #tpu.dot_dimension_numbers<[1], [0], [0], [1], [0, 0, 1, 1], [], []>} : vector<2x32xf32>, vector<32x128xf32>, vector<2x128xf32> -> vector<2x128xf32>
    %cst_136 = arith.constant dense<0.000000e+00> : vector<2x128xf32>
    %346 = tpu.matmul %344, %1, %cst_136 {dimension_numbers = #tpu.dot_dimension_numbers<[1], [0], [0], [1], [0, 0, 1, 1], [], []>} : vector<2x32xf32>, vector<32x128xf32>, vector<2x128xf32> -> vector<2x128xf32>
    %347 = arith.addf %346, %345 : vector<2x128xf32>
    %348 = vector.broadcast %5 : vector<1x128xf32> to vector<2x128xf32>
    %349 = arith.addf %347, %348 : vector<2x128xf32>
    %350 = math.tanh %349 : vector<2x128xf32>
    %cst_137 = arith.constant 5.000000e-01 : f32
    %351 = vector.broadcast %cst_137 : f32 to vector<2x128xf32>
    %352 = arith.mulf %351, %350 : vector<2x128xf32>
    %cst_138 = arith.constant 5.000000e-01 : f32
    %353 = vector.broadcast %cst_138 : f32 to vector<2x128xf32>
    %354 = arith.addf %352, %353 : vector<2x128xf32>
    %355 = arith.select %94, %350, %354 : vector<2x128xi1>, vector<2x128xf32>
    %356 = vector.extract_strided_slice %355 {offsets = [0, 0], sizes = [2, 32], strides = [1, 1]} : vector<2x128xf32> to vector<2x32xf32>
    %357 = vector.extract_strided_slice %355 {offsets = [0, 32], sizes = [2, 32], strides = [1, 1]} : vector<2x128xf32> to vector<2x32xf32>
    %358 = vector.extract_strided_slice %355 {offsets = [0, 64], sizes = [2, 32], strides = [1, 1]} : vector<2x128xf32> to vector<2x32xf32>
    %359 = vector.extract_strided_slice %355 {offsets = [0, 96], sizes = [2, 32], strides = [1, 1]} : vector<2x128xf32> to vector<2x32xf32>
    %360 = arith.mulf %357, %324 : vector<2x32xf32>
    %361 = arith.mulf %356, %359 : vector<2x32xf32>
    %362 = arith.addf %360, %361 : vector<2x32xf32>
    %363 = math.tanh %362 : vector<2x32xf32>
    %364 = arith.mulf %358, %363 : vector<2x32xf32>
    %cst_139 = arith.constant dense<0.000000e+00> : vector<2x128xf32>
    %365 = tpu.matmul %344, %2, %cst_139 {dimension_numbers = #tpu.dot_dimension_numbers<[1], [0], [0], [1], [0, 0, 1, 1], [], []>} : vector<2x32xf32>, vector<32x128xf32>, vector<2x128xf32> -> vector<2x128xf32>
    %366 = vector.extract_strided_slice %91 {offsets = [14, 0], sizes = [2, 128], strides = [1, 1]} : vector<16x128xf32> to vector<2x128xf32>
    %367 = arith.addf %366, %365 : vector<2x128xf32>
    %368 = math.tanh %367 : vector<2x128xf32>
    %cst_140 = arith.constant 5.000000e-01 : f32
    %369 = vector.broadcast %cst_140 : f32 to vector<2x128xf32>
    %370 = arith.mulf %369, %368 : vector<2x128xf32>
    %cst_141 = arith.constant 5.000000e-01 : f32
    %371 = vector.broadcast %cst_141 : f32 to vector<2x128xf32>
    %372 = arith.addf %370, %371 : vector<2x128xf32>
    %373 = arith.select %94, %368, %372 : vector<2x128xi1>, vector<2x128xf32>
    %374 = vector.extract_strided_slice %373 {offsets = [0, 0], sizes = [2, 32], strides = [1, 1]} : vector<2x128xf32> to vector<2x32xf32>
    %375 = vector.extract_strided_slice %373 {offsets = [0, 32], sizes = [2, 32], strides = [1, 1]} : vector<2x128xf32> to vector<2x32xf32>
    %376 = vector.extract_strided_slice %373 {offsets = [0, 64], sizes = [2, 32], strides = [1, 1]} : vector<2x128xf32> to vector<2x32xf32>
    %377 = vector.extract_strided_slice %373 {offsets = [0, 96], sizes = [2, 32], strides = [1, 1]} : vector<2x128xf32> to vector<2x32xf32>
    %378 = arith.mulf %375, %342 : vector<2x32xf32>
    %379 = arith.mulf %374, %377 : vector<2x32xf32>
    %380 = arith.addf %378, %379 : vector<2x32xf32>
    %381 = math.tanh %380 : vector<2x32xf32>
    %382 = arith.mulf %376, %381 : vector<2x32xf32>
    %cst_142 = arith.constant dense<0.000000e+00> : vector<2x128xf32>
    %383 = tpu.matmul %364, %3, %cst_142 {dimension_numbers = #tpu.dot_dimension_numbers<[1], [0], [0], [1], [0, 0, 1, 1], [], []>} : vector<2x32xf32>, vector<32x128xf32>, vector<2x128xf32> -> vector<2x128xf32>
    %cst_143 = arith.constant dense<0.000000e+00> : vector<2x128xf32>
    %384 = tpu.matmul %382, %1, %cst_143 {dimension_numbers = #tpu.dot_dimension_numbers<[1], [0], [0], [1], [0, 0, 1, 1], [], []>} : vector<2x32xf32>, vector<32x128xf32>, vector<2x128xf32> -> vector<2x128xf32>
    %385 = arith.addf %384, %383 : vector<2x128xf32>
    %386 = vector.broadcast %5 : vector<1x128xf32> to vector<2x128xf32>
    %387 = arith.addf %385, %386 : vector<2x128xf32>
    %388 = math.tanh %387 : vector<2x128xf32>
    %cst_144 = arith.constant 5.000000e-01 : f32
    %389 = vector.broadcast %cst_144 : f32 to vector<2x128xf32>
    %390 = arith.mulf %389, %388 : vector<2x128xf32>
    %cst_145 = arith.constant 5.000000e-01 : f32
    %391 = vector.broadcast %cst_145 : f32 to vector<2x128xf32>
    %392 = arith.addf %390, %391 : vector<2x128xf32>
    %393 = arith.select %94, %388, %392 : vector<2x128xi1>, vector<2x128xf32>
    %394 = vector.extract_strided_slice %393 {offsets = [0, 0], sizes = [2, 32], strides = [1, 1]} : vector<2x128xf32> to vector<2x32xf32>
    %395 = vector.extract_strided_slice %393 {offsets = [0, 32], sizes = [2, 32], strides = [1, 1]} : vector<2x128xf32> to vector<2x32xf32>
    %396 = vector.extract_strided_slice %393 {offsets = [0, 64], sizes = [2, 32], strides = [1, 1]} : vector<2x128xf32> to vector<2x32xf32>
    %397 = vector.extract_strided_slice %393 {offsets = [0, 96], sizes = [2, 32], strides = [1, 1]} : vector<2x128xf32> to vector<2x32xf32>
    %398 = arith.mulf %395, %362 : vector<2x32xf32>
    %399 = arith.mulf %394, %397 : vector<2x32xf32>
    %400 = arith.addf %398, %399 : vector<2x32xf32>
    %401 = math.tanh %400 : vector<2x32xf32>
    %402 = arith.mulf %396, %401 : vector<2x32xf32>
    %403 = tpu.concatenate %136, %174, %212, %250, %288, %326, %364, %402 in 0 : vector<2x32xf32>, vector<2x32xf32>, vector<2x32xf32>, vector<2x32xf32>, vector<2x32xf32>, vector<2x32xf32>, vector<2x32xf32>, vector<2x32xf32> -> vector<16x32xf32>
    %cst_146 = arith.constant dense<0.000000e+00> : vector<16x16xf32>
    %404 = tpu.matmul %403, %6, %cst_146 {dimension_numbers = #tpu.dot_dimension_numbers<[1], [0], [0], [1], [0, 0, 1, 1], [], []>} : vector<16x32xf32>, vector<32x16xf32>, vector<16x16xf32> -> vector<16x16xf32>
    %405 = vector.broadcast %7 : vector<1x16xf32> to vector<16x16xf32>
    %406 = arith.addf %404, %405 : vector<16x16xf32>
    %cst_147 = arith.constant dense<0xFF800000> : vector<16xf32>
    %407 = vector.multi_reduction <maximumf>, %406, %cst_147 [1] : vector<16x16xf32> to vector<16xf32>
    %408 = vector.shape_cast %407 : vector<16xf32> to vector<16x1xf32>
    %409 = vector.broadcast %408 : vector<16x1xf32> to vector<16x16xf32>
    %410 = arith.subf %406, %409 : vector<16x16xf32>
    %411 = math.exp %410 : vector<16x16xf32>
    %cst_148 = arith.constant dense<0.000000e+00> : vector<16xf32>
    %412 = vector.multi_reduction <add>, %411, %cst_148 [1] : vector<16x16xf32> to vector<16xf32>
    %413 = vector.shape_cast %412 : vector<16xf32> to vector<16x1xf32>
    %414 = math.log %413 : vector<16x1xf32>
    %415 = vector.broadcast %414 : vector<16x1xf32> to vector<16x16xf32>
    %416 = arith.subf %410, %415 : vector<16x16xf32>
    %c0_149 = arith.constant 0 : index
    %c0_150 = arith.constant 0 : index
    %417 = vector.load %arg10[%c0_149, %c0_150] : memref<16x16xf32, #tpu.memory_space<vmem>>, vector<16x16xf32>
    tpu.vector_store %arg10[%c0_149, %c0_150], %416 {strides = array<i32>} : memref<16x16xf32, #tpu.memory_space<vmem>>, vector<16x16xf32>,
    return
  }
}

</mosaic_0001>

<bundles_post_ra>
// kernel: _forward_impl.1
= control target key start
LH: loop header
LB: loop body
LE: loop exit
PB: predicated region body
PF: predicated region fallthrough
CT: control target
= control target key end

     0   :  { %15 = vsyncpa [#allocation4], 0  ;;  %s2198_s0 = inlined_call_operand.vmem [shape: s32[2,8], index: 0, kind: input, shape index: {}]   ;;  %s2199_s1 = inlined_call_operand.vmem [shape: f32[50,32], index: 1, kind: input, shape index: {}]   ;;  %s2200_s2 = inlined_call_operand.vmem [shape: f32[32,128], index: 2, kind: input, shape index: {}]   ;;  %s2201_s3 = inlined_call_operand.vmem [shape: f32[32,128], index: 3, kind: input, shape index: {}]   ;;  %s2202_s4 = inlined_call_operand.vmem [shape: f32[1,128], index: 4, kind: input, shape index: {}]   ;;  %s2203_s5 = inlined_call_operand.vmem [shape: f32[32,128], index: 5, kind: input, shape index: {}]   ;;  %s2204_s6 = inlined_call_operand.hbm [shape: f32[32,128], index: 6, kind: input, shape index: {}]   ;;  %s2205_s7 = inlined_call_operand.vmem [shape: f32[1,128], index: 7, kind: input, shape index: {}]   ;;  %s2206_s8 = inlined_call_operand.vmem [shape: f32[32,16], index: 8, kind: input, shape index: {}]   ;;  %s2207_s9 = inlined_call_operand.vmem [shape: f32[1,16], index: 9, kind: input, shape index: {}]   ;;  %s2208_s10 = inlined_call_operand.vmem [shape: f32[16,16], index: 10, kind: output, shape index: {}]  }
   0x1   :  { %s22_s15 = sshll.u32 %s2198_s0, 4  ;;  %s23_s15 = int_to_ptr.vmem [resolvable:$true] %s22_s15 }
   0x2   :  { %16 = vsyncpa [#allocation3], 0  ;;  %s40_s18 = sshll.u32 %s2204_s6, 4  ;;  %s1635_s19 = smov [#allocation2]   ;;  %s41_s18 = int_to_ptr.hbm [resolvable:$true] %s40_s18 }
   0x3   :  { %25 = dma.vmem_to_smem %s23_s15, 32, %s1635_s19, [#allocation4]  }
   0x4   :  { %s1636_s20 = smov [#allocation5]   ;;  %s1637_s22 = smov 128  }
   0x5   :  { %s42_s21 = sshll.u32 %s1636_s20, 4  ;;  %s1638_s23 = smov 8   ;;  %s43_s21 = int_to_ptr.vmem [resolvable:$true] %s42_s21 }
   0x6   :  { %48 = dma.hbm_to_vmem [thread:$0]  %s41_s18, 512, %s43_s21, [#allocation3], %s1637_s22, %s1637_s22, %s1638_s23  }
   0x7   :  { %1631 = dma.done.wait [#allocation4], 32  }
   0x8   :  { %1632 = vsyncadd [#allocation4], 4294967264 }
   0x9   :  { %1633 = dma.done.wait [#allocation3], 512  }
   0xa   :  { %1634 = vsyncadd [#allocation3], 4294966784 }
   0xb   :  { %63 = sfence }
   0xc   :  { %v67_v0 = vld [vmem:[%s2200_s2 + $0x18] sm:$0xff]  ;;  %v66_v1 = vld [vmem:[%s2200_s2 + $0x10] sm:$0xff]  ;;  %s87_s28 = sld [smem:[#allocation2]]  ;;  %v65_v4 = vld [vmem:[%s2200_s2 + $0x8] sm:$0xff]  ;;  %v1639_v8 = vmov 0.0   ;;  %vm241_vm0 = vcmask 1040384   ;;  %v295_v36 = vlaneseq }
   0xd   :  { %v1712_v2 = vld [vmem:[%s2201_s3 + $0x18] sm:$0xff]  ;;  %284 = vmatpush.msra.mxu0 %v67_v0  ;;  %v1718_v3 = vld [vmem:[%s2201_s3 + $0x10] sm:$0xff]  ;;  %s1365_s11 = sld [smem:[#allocation2 + $0x80]]  ;;  %v1726_v5 = vld [vmem:[%s2201_s3 + $0x8] sm:$0xff]  ;;  %vm243_vm1 = vcmask 1041408   ;;  %vm245_vm2 = vcmask 1042432  }
   0xe   :  { %313 = vmatpush.msra.mxu1 %v1712_v2  ;;  %s1728_s16 = sld [smem:[#allocation2 + $0x1]]  ;;  %v64_v6 = vld [vmem:[%s2200_s2] sm:$0xff]  ;;  %vm247_vm3 = vcmask 1043456   ;;  %vm249_vm4 = vcmask 1044480   ;;  %vm251_vm5 = vcmask 1045504   ;;  %vm253_vm6 = vcmask 1046528  }
   0xf   :  { %285 = vmatpush.msra.mxu0 %v66_v1  ;;  %s1731_s17 = sld [smem:[#allocation2 + $0x81]]  ;;  %v1758_v7 = vld [vmem:[%s2201_s3] sm:$0xff]  ;;  %vm265_vm7 = vcmask 261120   ;;  %v1812_v37 = vand.u32 127, %v295_v36  ;;  %v1823_v48 = vld [vmem:[#allocation5 + $0x18] sm:$0xff]  ;;  %v1825_v49 = vld [vmem:[#allocation5 + $0x10] sm:$0xff] }
  0x10   :  { %314 = vmatpush.msra.mxu1 %v1718_v3  ;;  %s1736_s20 = sld [smem:[#allocation2 + $0x2]]  ;;  %v1806_v31 = vld [vmem:[%s2202_s4] ss:$0 sm:$0xff]  ;;  %s1640_s4 = smov 32   ;;  %355 = vmatpush.msra.mxu3 %v1823_v48  ;;  %v1829_v50 = vld [vmem:[#allocation5 + $0x8] sm:$0xff]  ;;  %v1844_v52 = vld [vmem:[%s2203_s5 + $0x18] sm:$0xff] }
  0x11   :  { %286 = vmatpush.msra.mxu0 %v65_v4  ;;  %s1739_s21 = sld [smem:[#allocation2 + $0x82]]  ;;  %vm297_vm8 = vcmp.ge.s32.totalorder %v1812_v37, 96  ;;  %478 = vmatpush.msra.mxu2 %v1823_v48  ;;  %v1835_v51 = vld [vmem:[#allocation5] sm:$0xff]  ;;  %v1854_v53 = vld [vmem:[%s2203_s5 + $0x10] sm:$0xff]  ;;  %v1862_v54 = vld [vmem:[%s2203_s5 + $0x8] sm:$0xff]  ;;  %vm1311_vm9 = vcmask 130048  }
  0x12   :  { %315 = vmatpush.msra.mxu1 %v1726_v5  ;;  %p88_p0 = scmp.gt.s32.totalorder %s87_s28, 0  ;;  %p1360_p1 = scmp.lt.s32.totalorder %s87_s28, 49  ;;  %356 = vmatpush.msra.mxu3 %v1825_v49  ;;  %v1870_v55 = vld [vmem:[%s2203_s5] sm:$0xff] }
  0x13   :  { %287 = vmatpush.msra.mxu0 %v64_v6  ;;  %p95_p2 = scmp.gt.s32.totalorder %s1365_s11, 0  ;;  %p1366_p3 = scmp.lt.s32.totalorder %s1365_s11, 49  ;;  %479 = vmatpush.msra.mxu2 %v1825_v49  ;;  %v1895_v63 = vld [vmem:[%s2205_s7] ss:$0 sm:$0xff] }
  0x14   :  { %s2210_s28 = smov (!%p88_p0, %s87_s28), 0  ;;  %p102_p4 = scmp.gt.s32.totalorder %s1728_s16, 0  ;;  %316 = vmatpush.msra.mxu1 %v1758_v7  ;;  %357 = vmatpush.msra.mxu3 %v1829_v50  ;;  %v82_v37 = vld [vmem:[%s2206_s8] sm:$0xff] }
  0x15   :  { %546 = vmatpush.msrb.mxu0 %v1712_v2  ;;  %s2212_s11 = smov (!%p95_p2, %s1365_s11), 0  ;;  %s2214_s28 = smov (!%p1360_p1, %s2210_s28), 49  ;;  %317 = vmatmul.f32.vlgmr.msra.gmra.mxu1 %v1639_v8 }
  0x16   :  { %s2216_s11 = smov (!%p1366_p3, %s2212_s11), 49  ;;  %s92_s23 = scalar_lea.vmem %s2199_s1, %s2214_s28  ;;  %425 = vmatpush.msrb.mxu1 %v1712_v2  ;;  %480 = vmatpush.msra.mxu2 %v1829_v50 }
  0x17   :  { %547 = vmatpush.msrb.mxu0 %v1718_v3  ;;  %s99_s25 = scalar_lea.vmem %s2199_s1, %s2216_s11  ;;  %p1372_p5 = scmp.lt.s32.totalorder %s1728_s16, 49  ;;  %v93_v12 = vld [vmem:[%s92_s23] sm:$0x1]  ;;  %358 = vmatpush.msra.mxu3 %v1835_v51 }
  0x18   :  { %s2218_s16 = smov (!%p102_p4, %s1728_s16), 0  ;;  %p109_p6 = scmp.gt.s32.totalorder %s1731_s17, 0  ;;  %426 = vmatpush.msrb.mxu1 %v1718_v3  ;;  %v100_v9 = vld [vmem:[%s99_s25] sm:$0x1]  ;;  %481 = vmatpush.msra.mxu2 %v1835_v51 }
  0x19   :  { %548 = vmatpush.msrb.mxu0 %v1726_v5  ;;  %p1378_p7 = scmp.lt.s32.totalorder %s1731_s17, 49  ;;  %s2220_s16 = smov (!%p1372_p5, %s2218_s16), 49  ;;  %v200_v11 = vrot.slane %v100_v9, 7  ;;  %359 = vmatmul.f32.vlgmr.msra.gmra.mxu3 %v1639_v8 }
  0x1a   :  { %s2222_s17 = smov (!%p109_p6, %s1731_s17), 0  ;;  %s106_s28 = scalar_lea.vmem %s2199_s1, %s2220_s16  ;;  %427 = vmatpush.msrb.mxu1 %v1726_v5  ;;  %625 = vmatpush.msrb.mxu2 %v1844_v52 }
  0x1b   :  { %549 = vmatpush.msrb.mxu0 %v1758_v7  ;;  %p116_p8 = scmp.gt.s32.totalorder %s1736_s20, 0  ;;  %s2224_s17 = smov (!%p1378_p7, %s2222_s17), 49  ;;  %v107_v10 = vld [vmem:[%s106_s28] sm:$0x1]  ;;  %v242_v15 = vsel %vm241_vm0, %v93_v12, %v200_v11  ;;  %380 = vmatpush.msrb.mxu3 %v1844_v52 }
  0x1c   :  { %s113_s12 = scalar_lea.vmem %s2199_s1, %s2224_s17  ;;  %p1384_p9 = scmp.lt.s32.totalorder %s1736_s20, 49  ;;  %428 = vmatpush.msrb.mxu1 %v1758_v7  ;;  %v203_v14 = vrot.slane %v107_v10, 6  ;;  %626 = vmatpush.msrb.mxu2 %v1854_v53 }
  0x1d   :  { %s117_s29 = scalar_select %p116_p8, %s1736_s20, 0  ;;  %v114_v13 = vld [vmem:[%s113_s12] sm:$0x1]  ;;  %381 = vmatpush.msrb.mxu3 %v1854_v53 }
  0x1e   :  { %p123_p10 = scmp.gt.s32.totalorder %s1739_s21, 0  ;;  %p1390_p11 = scmp.lt.s32.totalorder %s1739_s21, 49  ;;  %v206_v17 = vrot.slane %v114_v13, 5  ;;  %v244_v18 = vsel %vm243_vm1, %v242_v15, %v203_v14  ;;  %599 = vmatpush.msra.mxu1 %v1823_v48  ;;  %627 = vmatpush.msrb.mxu2 %v1862_v54 }
  0x1f   :  { %s2226_s29 = smov (!%p1384_p9, %s117_s29), 49  ;;  %s1395_s16 = sld [smem:[#allocation2 + $0x3]]  ;;  %382 = vmatpush.msrb.mxu3 %v1862_v54 }
  0x20   :  { %s2228_s21 = smov (!%p123_p10, %s1739_s21), 0  ;;  %s120_s15 = scalar_lea.vmem %s2199_s1, %s2226_s29  ;;  %v246_v21 = vsel %vm245_vm2, %v244_v18, %v206_v17  ;;  %600 = vmatpush.msra.mxu1 %v1825_v49  ;;  %628 = vmatpush.msrb.mxu2 %v1870_v55 }
  0x21   :  { %s2230_s21 = smov (!%p1390_p11, %s2228_s21), 49  ;;  %s1401_s17 = sld [smem:[#allocation2 + $0x83]]  ;;  %v121_v16 = vld [vmem:[%s120_s15] sm:$0x1]  ;;  %383 = vmatpush.msrb.mxu3 %v1870_v55 }
  0x22   :  { %s127_s20 = scalar_lea.vmem %s2199_s1, %s2230_s21  ;;  %v209_v20 = vrot.slane %v121_v16, 4  ;;  %601 = vmatpush.msra.mxu1 %v1829_v50  ;;  %s1641_s5 = smov 64  }
  0x23   :  { %v128_v19 = vld [vmem:[%s127_s20] sm:$0x1]  ;;  %504 = vmatpush.msra.mxu3 %v1844_v52  ;;  %s1407_s7 = sld [smem:[#allocation2 + $0x4]] }
  0x24   :  { %v212_v22 = vrot.slane %v128_v19, 3  ;;  %v248_v23 = vsel %vm247_vm3, %v246_v21, %v209_v20  ;;  %602 = vmatpush.msra.mxu1 %v1835_v51  ;;  %s1413_s15 = sld [smem:[#allocation2 + $0x84]] }
  0x25   :  { %p130_p12 = scmp.gt.s32.totalorder %s1395_s16, 0  ;;  %p1396_p13 = scmp.lt.s32.totalorder %s1395_s16, 49  ;;  %505 = vmatpush.msra.mxu3 %v1854_v53 }
  0x26   :  { %v250_v25 = vsel %vm249_vm4, %v248_v23, %v212_v22  ;;  %s1925_s18 = sld [smem:[#allocation2 + $0x6]] }
  0x27   :  { %s2232_s16 = smov (!%p130_p12, %s1395_s16), 0  ;;  %p137_p0 = scmp.gt.s32.totalorder %s1401_s17, 0  ;;  %506 = vmatpush.msra.mxu3 %v1862_v54 }
  0x28   :  { %p1402_p1 = scmp.lt.s32.totalorder %s1401_s17, 49  ;;  %s2234_s16 = smov (!%p1396_p13, %s2232_s16), 49 }
  0x29   :  { %s2236_s17 = smov (!%p137_p0, %s1401_s17), 0  ;;  %s134_s22 = scalar_lea.vmem %s2199_s1, %s2234_s16  ;;  %507 = vmatpush.msra.mxu3 %v1870_v55 }
  0x2a   :  { %v135_v24 = vld [vmem:[%s134_s22] sm:$0x1]  ;;  %s2238_s17 = smov (!%p1402_p1, %s2236_s17), 49  ;;  %s1419_s16 = sld [smem:[#allocation2 + $0x5]] }
  0x2b   :  { %v215_v26 = vrot.slane %v135_v24, 2  ;;  %s141_s24 = scalar_lea.vmem %s2199_s1, %s2238_s17  ;;  %p144_p2 = scmp.gt.s32.totalorder %s1407_s7, 0 }
  0x2c   :  { %v142_v27 = vld [vmem:[%s141_s24] sm:$0x1]  ;;  %s1425_s17 = sld [smem:[#allocation2 + $0x85]]  ;;  %p151_p3 = scmp.gt.s32.totalorder %s1413_s15, 0 }
  0x2d   :  { %v252_v28 = vsel %vm251_vm5, %v250_v25, %v215_v26  ;;  %v218_v29 = vrot.slane %v142_v27, 1  ;;  %p1408_p4 = scmp.lt.s32.totalorder %s1407_s7, 49  ;;  %s2240_s7 = smov (!%p144_p2, %s1407_s7), 0 }
  0x2e   :  { %s152_s19 = scalar_select %p151_p3, %s1413_s15, 0 }
  0x2f   :  { %v254_v30 = vsel %vm253_vm6, %v252_v28, %v218_v29  ;;  %s2242_s7 = smov (!%p1408_p4, %s2240_s7), 49  ;;  %s1437_s20 = sld [smem:[#allocation2 + $0x86]] }
  0x30   :  { %1455 = vmatmul.msk.f32.vlgmr.msra.gmra.mxu0 %vm265_vm7, %v254_v30  ;;  %p158_p5 = scmp.gt.s32.totalorder %s1419_s16, 0  ;;  %p1414_p7 = scmp.lt.s32.totalorder %s1413_s15, 49 }
  0x31   :  { %720 = vmatpush.msra.mxu0 %v1823_v48  ;;  %p1420_p8 = scmp.lt.s32.totalorder %s1419_s16, 49  ;;  %s1443_s21 = sld [smem:[#allocation2 + $0x7]] }
  0x32   :  { %p165_p6 = scmp.gt.s32.totalorder %s1425_s17, 0  ;;  %s2244_s16 = smov (!%p158_p5, %s1419_s16), 0 }
  0x33   :  { %721 = vmatpush.msra.mxu0 %v1825_v49  ;;  %p1426_p9 = scmp.lt.s32.totalorder %s1425_s17, 49  ;;  %p172_p10 = scmp.gt.s32.totalorder %s1925_s18, 0 }
  0x34   :  { %s2246_s17 = smov (!%p165_p6, %s1425_s17), 0  ;;  %s1449_s2 = sld [smem:[#allocation2 + $0x87]] }
  0x35   :  { %722 = vmatpush.msra.mxu0 %v1829_v50  ;;  %s2248_s19 = smov (!%p1414_p7, %s152_s19), 49  ;;  %s2250_s16 = smov (!%p1420_p8, %s2244_s16), 49 }
  0x36   :  { %s2252_s17 = smov (!%p1426_p9, %s2246_s17), 49  ;;  %p179_p11 = scmp.gt.s32.totalorder %s1437_s20, 0 }
  0x37   :  { %723 = vmatpush.msra.mxu0 %v1835_v51  ;;  %s173_s22 = scalar_select %p172_p10, %s1925_s18, 0 }
  0x38   :  { %s155_s24 = scalar_lea.vmem %s2199_s1, %s2248_s19  ;;  %p186_p12 = scmp.gt.s32.totalorder %s1443_s21, 0 }
  0x39   :  { %s162_s26 = scalar_lea.vmem %s2199_s1, %s2250_s16  ;;  %p1432_p13 = scmp.lt.s32.totalorder %s1925_s18, 49 }
  0x3a   :  { %p1438_p0 = scmp.lt.s32.totalorder %s1437_s20, 49  ;;  %p193_p1 = scmp.gt.s32.totalorder %s1449_s2, 0 }
  0x3b   :  { %s2254_s20 = smov (!%p179_p11, %s1437_s20), 0  ;;  %p1444_p2 = scmp.lt.s32.totalorder %s1443_s21, 49 }
  0x3c   :  { %s187_s3 = scalar_select %p186_p12, %s1443_s21, 0 }
  0x3d   :  { %p1450_p3 = scmp.lt.s32.totalorder %s1449_s2, 49  ;;  %s2256_s2 = smov (!%p193_p1, %s1449_s2), 0 }
  0x3e   :  { %s2258_s22 = smov (!%p1432_p13, %s173_s22), 49  ;;  %s2260_s20 = smov (!%p1438_p0, %s2254_s20), 49 }
  0x3f   :  { %s2262_s3 = smov (!%p1444_p2, %s187_s3), 49  ;;  %s2264_s2 = smov (!%p1450_p3, %s2256_s2), 49 }
  0x40   :  { %s169_s29 = scalar_lea.vmem %s2199_s1, %s2252_s17  ;;  %s176_s12 = scalar_lea.vmem %s2199_s1, %s2258_s22 }
  0x41   :  { %s148_s15 = scalar_lea.vmem %s2199_s1, %s2242_s7  ;;  %s183_s19 = scalar_lea.vmem %s2199_s1, %s2260_s20  ;;  %v177_v36 = vld [vmem:[%s176_s12] sm:$0x1] }
  0x42   :  { %s190_s0 = scalar_lea.vmem %s2199_s1, %s2262_s3  ;;  %s197_s22 = scalar_lea.vmem %s2199_s1, %s2264_s2 }
  0x92   :  { %v318_v33 = vpop.f32.mrf.mxu1 }
  0x9c   :  { %v360_v59 = vpop.f32.mrf.mxu3 }
  0xad   :  { %v289_v32 = vpop.f32.mrf.mxu0 }
  0xae   :  { %v1809_v34 = vadd.f32 %v1806_v31, %v289_v32  ;;  %v156_v32 = vld [vmem:[%s155_s24] sm:$0x1] }
  0xb0   :  { %v321_v35 = vadd.f32 %v318_v33, %v1809_v34  ;;  %v163_v33 = vld [vmem:[%s162_s26] sm:$0x1] }
  0xb2   :  { %1523 = vtanh.f32 %v321_v35  ;;  %v170_v35 = vld [vmem:[%s169_s29] sm:$0x1] }
  0xb8   :  { %v1524_v38 = vpop.eup %1523 }
  0xb9   :  { %v323_v39 = vmul.f32 0.5, %v1524_v38 }
  0xbb   :  { %v324_v40 = vadd.f32 0.5, %v323_v39  ;;  %v184_v39 = vld [vmem:[%s183_s19] sm:$0x1] }
  0xbd   :  { %v325_v41 = vsel %vm297_vm8, %v1524_v38, %v324_v40  ;;  %v149_v38 = vld [vmem:[%s148_s15] sm:$0x1] }
  0xbe   :  { %328 = vrot.lane.b32.xlu0 %v325_v41, %s1640_s4  ;;  %v326_v44 = vmul.f32 0.0, %v325_v41  ;;  %v191_v40 = vld [vmem:[%s190_s0] sm:$0x1] }
 0x130   :  { %v329_v42 = vpop.permute.xlu0 %328 }
 0x131   :  { %v331_v43 = vmul.f32 %v329_v42, %v325_v41  ;;  %v224_v42 = vrot.slane %v163_v33, 6 }
 0x133   :  { %333 = vrot.lane.b32.xlu0 %v331_v43, %s1640_s4  ;;  %v227_v43 = vrot.slane %v170_v35, 5 }
 0x1a5   :  { %v334_v45 = vpop.permute.xlu0 %333 }
 0x1a6   :  { %v1819_v46 = vadd.f32 %v334_v45, %v326_v44  ;;  %v198_v44 = vld [vmem:[%s197_s22] sm:$0x1]  ;;  %v230_v45 = vrot.slane %v177_v36, 4 }
 0x1a8   :  { %1525 = vtanh.f32 %v1819_v46  ;;  %v442_v19 = vrot.slane %v1819_v46, 6  ;;  %v233_v46 = vrot.slane %v184_v39, 3 }
 0x1ae   :  { %v1526_v47 = vpop.eup %1525 }
 0x1af   :  { %339 = vrot.lane.b32.xlu1 %v1526_v47, %s1640_s4 }
 0x221   :  { %v340_v56 = vpop.permute.xlu1 %339 }
 0x222   :  { %v342_v57 = vmul.f32 %v340_v56, %v325_v41  ;;  %v221_v41 = vrot.slane %v156_v32, 7  ;;  %v236_v56 = vrot.slane %v191_v40, 2 }
 0x224   :  { %364 = vrot.lane.b32.xlu1 %v342_v57, %s1641_s5  ;;  %v255_v47 = vsel %vm241_vm0, %v149_v38, %v221_v41 }
 0x225   :  { %v256_v57 = vsel %vm243_vm1, %v255_v47, %v224_v42 }
 0x296   :  { %v365_v58 = vpop.permute.xlu1 %364 }
 0x297   :  { %1457 = vmatmul.msk.f32.vlgmr.msrb.gmra.mxu3 %vm265_vm7, %v365_v58  ;;  %1458 = vmatmul.msk.f32.vlgmr.msrb.gmra.mxu1 %vm265_vm7, %v365_v58  ;;  %v239_v58 = vrot.slane %v198_v44, 1 }
 0x298   :  { %667 = vmatpush.msrb.mxu3 %v1712_v2  ;;  %746 = vmatpush.msrb.mxu1 %v1844_v52 }
 0x29a   :  { %668 = vmatpush.msrb.mxu3 %v1718_v3  ;;  %747 = vmatpush.msrb.mxu1 %v1854_v53 }
 0x29c   :  { %669 = vmatpush.msrb.mxu3 %v1726_v5  ;;  %748 = vmatpush.msrb.mxu1 %v1862_v54 }
 0x29e   :  { %670 = vmatpush.msrb.mxu3 %v1758_v7  ;;  %749 = vmatpush.msrb.mxu1 %v1870_v55 }
 0x314   :  { %v430_v60 = vpop.f32.mrf.mxu1 }
 0x315   :  { %v434_v61 = vrot.slane %v430_v60, 6 }
 0x317   :  { %v436_v62 = vadd.f32 %v434_v61, %v1809_v34 }
 0x319   :  { %1527 = vtanh.f32 %v436_v62 }
 0x31a   :  { %v385_v0 = vpop.f32.mrf.mxu3 }
 0x31b   :  { %v386_v1 = vadd.f32 %v385_v0, %v360_v59  ;;  %v257_v59 = vsel %vm245_vm2, %v256_v57, %v227_v43 }
 0x31c   :  { %v258_v60 = vsel %vm247_vm3, %v257_v59, %v230_v45 }
 0x31d   :  { %v391_v4 = vadd.f32 %v1895_v63, %v386_v1  ;;  %v259_v61 = vsel %vm249_vm4, %v258_v60, %v233_v46 }
 0x31e   :  { %v260_v62 = vsel %vm251_vm5, %v259_v61, %v236_v56 }
 0x31f   :  { %v1528_v6 = vpop.eup %1527  ;;  %1529 = vtanh.f32 %v391_v4  ;;  %v261_v0 = vsel %vm253_vm6, %v260_v62, %v239_v58 }
 0x320   :  { %v438_v8 = vmul.f32 0.5, %v1528_v6  ;;  %1456 = vmatmul.msk.f32.gmra.mxu0 %vm265_vm7, %v261_v0 }
 0x322   :  { %v439_v9 = vadd.f32 0.5, %v438_v8 }
 0x324   :  { %v1900_v10 = vsel %vm297_vm8, %v1528_v6, %v439_v9 }
 0x325   :  { %v1530_v11 = vpop.eup %1529  ;;  %446 = vrot.lane.b32.xlu2 %v1900_v10, %s1640_s4  ;;  %v444_v20 = vmul.f32 %v442_v19, %v1900_v10 }
 0x326   :  { %v393_v12 = vmul.f32 0.5, %v1530_v11 }
 0x328   :  { %v394_v13 = vadd.f32 0.5, %v393_v12 }
 0x32a   :  { %v1906_v14 = vsel %vm297_vm8, %v1530_v11, %v394_v13 }
 0x32b   :  { %v396_v23 = vmul.f32 0.0, %v1906_v14 }
 0x32d   :  { %398 = vrot.lane.b32.xlu2 %v1906_v14, %s1640_s4 }
 0x37f   :  { %v447_v15 = vpop.permute.xlu2 %446 }
 0x380   :  { %v449_v16 = vmul.f32 %v447_v15, %v1900_v10 }
 0x382   :  { %451 = vrot.lane.b32.xlu0 %v449_v16, %s1640_s4 }
 0x387   :  { %v399_v17 = vpop.permute.xlu2 %398 }
 0x388   :  { %v401_v18 = vmul.f32 %v399_v17, %v1906_v14 }
 0x38a   :  { %403 = vrot.lane.b32.xlu1 %v401_v18, %s1640_s4 }
 0x39d   :  { %v1987_v9 = vpop.f32.mrf.mxu0 }
 0x3f4   :  { %v452_v21 = vpop.permute.xlu0 %451 }
 0x3f5   :  { %v1916_v22 = vadd.f32 %v452_v21, %v444_v20 }
 0x3f7   :  { %1531 = vtanh.f32 %v1916_v22  ;;  %v563_v32 = vrot.slane %v1916_v22, 6 }
 0x3fc   :  { %v404_v24 = vpop.permute.xlu1 %403 }
 0x3fd   :  { %v1532_v25 = vpop.eup %1531  ;;  %v1920_v26 = vadd.f32 %v404_v24, %v396_v23 }
 0x3fe   :  { %457 = vrot.lane.b32.xlu2 %v1532_v25, %s1640_s4 }
 0x3ff   :  { %1533 = vtanh.f32 %v1920_v26 }
 0x405   :  { %v1534_v27 = vpop.eup %1533 }
 0x406   :  { %409 = vrot.lane.b32.xlu0 %v1534_v27, %s1640_s4 }
 0x458   :  { %v458_v28 = vpop.permute.xlu2 %457 }
 0x459   :  { %v460_v29 = vmul.f32 %v458_v28, %v1900_v10 }
 0x45b   :  { %v487_v30 = vrot.slane %v460_v29, 2 }
 0x45d   :  { %488 = vrot.lane.b32.xlu1 %v487_v30, %s1641_s5 }
 0x478   :  { %v410_v1 = vpop.permute.xlu0 %409 }
 0x479   :  { %v1968_v4 = vmul.f32 %v410_v1, %v1906_v14 }
 0x47b   :  { %462 = vrot.lane.b32.xlu2 %v1968_v4, %s1641_s5 }
 0x4cf   :  { %v489_v6 = vpop.permute.xlu1 %488 }
 0x4d0   :  { %1460 = vmatmul.msk.f32.vlgmr.msra.gmra.mxu3 %vm265_vm7, %v489_v6  ;;  %1461 = vmatmul.msk.f32.vlgmr.msrb.gmra.mxu0 %vm265_vm7, %v489_v6 }
 0x4d1   :  { %863 = vmatpush.msrb.mxu0 %v1844_v52  ;;  %838 = vmatpush.msra.mxu3 %v1823_v48 }
 0x4d3   :  { %864 = vmatpush.msrb.mxu0 %v1854_v53  ;;  %839 = vmatpush.msra.mxu3 %v1825_v49 }
 0x4d5   :  { %v463_v8 = vpop.permute.xlu2 %462  ;;  %865 = vmatpush.msrb.mxu0 %v1862_v54  ;;  %840 = vmatpush.msra.mxu3 %v1829_v50 }
 0x4d6   :  { %1459 = vmatmul.msk.f32.vlgmr.msra.gmra.mxu2 %vm265_vm7, %v463_v8 }
 0x4d7   :  { %788 = vmatpush.msra.mxu2 %v1712_v2  ;;  %866 = vmatpush.msrb.mxu0 %v1870_v55 }
 0x4d8   :  { %841 = vmatpush.msra.mxu3 %v1835_v51 }
 0x4d9   :  { %789 = vmatpush.msra.mxu2 %v1718_v3 }
 0x4db   :  { %790 = vmatpush.msra.mxu2 %v1726_v5 }
 0x4dd   :  { %791 = vmatpush.msra.mxu2 %v1758_v7 }
 0x54d   :  { %v551_v10 = vpop.f32.mrf.mxu0 }
 0x54e   :  { %v555_v11 = vrot.slane %v551_v10, 4 }
 0x550   :  { %v557_v12 = vadd.f32 %v555_v11, %v1809_v34 }
 0x552   :  { %1535 = vtanh.f32 %v557_v12 }
 0x553   :  { %v509_v14 = vpop.f32.mrf.mxu3 }
 0x558   :  { %v1536_v13 = vpop.eup %1535 }
 0x559   :  { %v483_v15 = vpop.f32.mrf.mxu2  ;;  %v559_v16 = vmul.f32 0.5, %v1536_v13 }
 0x55a   :  { %v510_v17 = vadd.f32 %v509_v14, %v483_v15 }
 0x55b   :  { %v560_v18 = vadd.f32 0.5, %v559_v16 }
 0x55c   :  { %v512_v19 = vadd.f32 %v1895_v63, %v510_v17 }
 0x55d   :  { %v561_v20 = vsel %vm297_vm8, %v1536_v13, %v560_v18 }
 0x55e   :  { %1537 = vtanh.f32 %v512_v19  ;;  %567 = vrot.lane.b32.xlu0 %v561_v20, %s1640_s4  ;;  %v565_v33 = vmul.f32 %v563_v32, %v561_v20 }
 0x564   :  { %v1538_v21 = vpop.eup %1537 }
 0x565   :  { %v514_v23 = vmul.f32 0.5, %v1538_v21 }
 0x567   :  { %v515_v24 = vadd.f32 0.5, %v514_v23 }
 0x569   :  { %v516_v25 = vsel %vm297_vm8, %v1538_v21, %v515_v24 }
 0x56a   :  { %519 = vrot.lane.b32.xlu1 %v516_v25, %s1640_s4  ;;  %v517_v39 = vmul.f32 %v516_v25, %v1920_v26 }
 0x5d0   :  { %v568_v27 = vpop.permute.xlu0 %567 }
 0x5d1   :  { %v570_v28 = vmul.f32 %v568_v27, %v561_v20 }
 0x5d3   :  { %572 = vrot.lane.b32.xlu2 %v570_v28, %s1640_s4 }
 0x5dc   :  { %v520_v29 = vpop.permute.xlu1 %519 }
 0x5dd   :  { %v522_v30 = vmul.f32 %v520_v29, %v516_v25 }
 0x5df   :  { %524 = vrot.lane.b32.xlu0 %v522_v30, %s1640_s4 }
 0x62d   :  { %v573_v35 = vpop.permute.xlu2 %572 }
 0x62e   :  { %v575_v36 = vadd.f32 %v573_v35, %v565_v33 }
 0x630   :  { %1539 = vtanh.f32 %v575_v36  ;;  %v684_v17 = vrot.slane %v575_v36, 6 }
 0x636   :  { %v1540_v38 = vpop.eup %1539 }
 0x637   :  { %578 = vrot.lane.b32.xlu1 %v1540_v38, %s1640_s4 }
 0x651   :  { %v525_v40 = vpop.permute.xlu0 %524 }
 0x652   :  { %v527_v41 = vadd.f32 %v525_v40, %v517_v39 }
 0x654   :  { %1541 = vtanh.f32 %v527_v41 }
 0x65a   :  { %v1542_v42 = vpop.eup %1541 }
 0x65b   :  { %530 = vrot.lane.b32.xlu2 %v1542_v42, %s1640_s4 }
 0x6a9   :  { %v579_v43 = vpop.permute.xlu1 %578 }
 0x6aa   :  { %v581_v44 = vmul.f32 %v579_v43, %v561_v20 }
 0x6ac   :  { %v608_v45 = vrot.slane %v581_v44, 4 }
 0x6ae   :  { %609 = vrot.lane.b32.xlu0 %v608_v45, %s1641_s5 }
 0x6b5   :  { %v531_v22 = vpop.permute.xlu2 %530 }
 0x6b6   :  { %v2004_v46 = vmul.f32 %v531_v22, %v516_v25 }
 0x6b8   :  { %583 = vrot.lane.b32.xlu1 %v2004_v46, %s1641_s5  ;;  %v1256_v32 = vrot.slane %v2004_v46, 6 }
 0x6ba   :  { %v1269_v38 = vsel %vm243_vm1, %v1968_v4, %v1256_v32 }
 0x720   :  { %v610_v47 = vpop.permute.xlu0 %609 }
 0x721   :  { %1463 = vmatmul.msk.f32.vlgmr.msrb.gmra.mxu2 %vm265_vm7, %v610_v47  ;;  %1464 = vmatmul.msk.f32.vlgmr.msrb.gmra.mxu3 %vm265_vm7, %v610_v47 }
 0x722   :  { %984 = vmatpush.msrb.mxu3 %v1844_v52  ;;  %958 = vmatpush.msrb.mxu2 %v1823_v48 }
 0x724   :  { %985 = vmatpush.msrb.mxu3 %v1854_v53  ;;  %959 = vmatpush.msrb.mxu2 %v1825_v49 }
 0x726   :  { %986 = vmatpush.msrb.mxu3 %v1862_v54  ;;  %960 = vmatpush.msrb.mxu2 %v1829_v50 }
 0x728   :  { %987 = vmatpush.msrb.mxu3 %v1870_v55  ;;  %961 = vmatpush.msrb.mxu2 %v1835_v51 }
 0x72a   :  { %v584_v26 = vpop.permute.xlu1 %583 }
 0x72b   :  { %1462 = vmatmul.msk.f32.vlgmr.msra.gmra.mxu1 %vm265_vm7, %v584_v26 }
 0x72c   :  { %905 = vmatpush.msra.mxu1 %v1712_v2 }
 0x72e   :  { %906 = vmatpush.msra.mxu1 %v1718_v3 }
 0x730   :  { %907 = vmatpush.msra.mxu1 %v1726_v5 }
 0x732   :  { %908 = vmatpush.msra.mxu1 %v1758_v7 }
 0x7a4   :  { %v672_v56 = vpop.f32.mrf.mxu3  ;;  %v630_v59 = vpop.f32.mrf.mxu2 }
 0x7a5   :  { %v676_v57 = vrot.slane %v672_v56, 2 }
 0x7a7   :  { %v678_v58 = vadd.f32 %v676_v57, %v1809_v34 }
 0x7a8   :  { %v604_v60 = vpop.f32.mrf.mxu1 }
 0x7a9   :  { %1543 = vtanh.f32 %v678_v58  ;;  %v631_v61 = vadd.f32 %v630_v59, %v604_v60 }
 0x7ab   :  { %v633_v62 = vadd.f32 %v1895_v63, %v631_v61 }
 0x7ad   :  { %1545 = vtanh.f32 %v633_v62 }
 0x7af   :  { %v1544_v0 = vpop.eup %1543 }
 0x7b0   :  { %v680_v1 = vmul.f32 0.5, %v1544_v0 }
 0x7b2   :  { %v681_v6 = vadd.f32 0.5, %v680_v1 }
 0x7b3   :  { %v1546_v8 = vpop.eup %1545 }
 0x7b4   :  { %v682_v10 = vsel %vm297_vm8, %v1544_v0, %v681_v6  ;;  %v635_v11 = vmul.f32 0.5, %v1546_v8 }
 0x7b5   :  { %688 = vrot.lane.b32.xlu2 %v682_v10, %s1640_s4  ;;  %v686_v18 = vmul.f32 %v684_v17, %v682_v10 }
 0x7b6   :  { %v636_v12 = vadd.f32 0.5, %v635_v11 }
 0x7b8   :  { %v637_v34 = vsel %vm297_vm8, %v1546_v8, %v636_v12 }
 0x7b9   :  { %640 = vrot.lane.b32.xlu0 %v637_v34, %s1640_s4  ;;  %v638_v21 = vmul.f32 %v637_v34, %v527_v41  ;;  %v2066_v41 = vadd.f32 %v1806_v31, %v1987_v9 }
 0x80f   :  { %v689_v13 = vpop.permute.xlu2 %688 }
 0x810   :  { %v691_v14 = vmul.f32 %v689_v13, %v682_v10 }
 0x812   :  { %693 = vrot.lane.b32.xlu1 %v691_v14, %s1640_s4 }
 0x82b   :  { %v641_v15 = vpop.permute.xlu0 %640 }
 0x82c   :  { %v643_v16 = vmul.f32 %v641_v15, %v637_v34 }
 0x82e   :  { %645 = vrot.lane.b32.xlu2 %v643_v16, %s1640_s4 }
 0x884   :  { %v694_v19 = vpop.permute.xlu1 %693 }
 0x885   :  { %v2033_v20 = vadd.f32 %v694_v19, %v686_v18 }
 0x887   :  { %1547 = vtanh.f32 %v2033_v20  ;;  %v802_v1 = vrot.slane %v2033_v20, 6 }
 0x888   :  { %v646_v23 = vpop.permute.xlu2 %645 }
 0x889   :  { %v2036_v24 = vadd.f32 %v646_v23, %v638_v21 }
 0x88b   :  { %1549 = vtanh.f32 %v2036_v24 }
 0x88d   :  { %v1548_v25 = vpop.eup %1547 }
 0x88e   :  { %699 = vrot.lane.b32.xlu0 %v1548_v25, %s1640_s4 }
 0x891   :  { %v1550_v27 = vpop.eup %1549 }
 0x892   :  { %651 = vrot.lane.b32.xlu1 %v1550_v27, %s1640_s4 }
 0x900   :  { %v700_v28 = vpop.permute.xlu0 %699 }
 0x901   :  { %v702_v29 = vmul.f32 %v700_v28, %v682_v10 }
 0x903   :  { %v729_v30 = vrot.slane %v702_v29, 6 }
 0x904   :  { %v652_v33 = vpop.permute.xlu1 %651 }
 0x905   :  { %v654_v35 = vmul.f32 %v652_v33, %v637_v34  ;;  %730 = vrot.lane.b32.xlu2 %v729_v30, %s1641_s5 }
 0x907   :  { %v1258_v36 = vrot.slane %v654_v35, 4  ;;  %704 = vrot.lane.b32.xlu0 %v654_v35, %s1641_s5 }
 0x909   :  { %v2047_v39 = vsel %vm247_vm3, %v1269_v38, %v1258_v36 }
 0x95f   :  { %v731_v40 = vpop.permute.xlu2 %730 }
 0x960   :  { %1466 = vmatmul.msk.f32.vlgmr.msrb.gmra.mxu1 %vm265_vm7, %v731_v40  ;;  %1467 = vmatmul.msk.f32.vlgmr.msra.gmra.mxu2 %vm265_vm7, %v731_v40 }
 0x961   :  { %1105 = vmatpush.msra.mxu2 %v1844_v52  ;;  %1079 = vmatpush.msrb.mxu1 %v1823_v48 }
 0x963   :  { %1106 = vmatpush.msra.mxu2 %v1854_v53  ;;  %1080 = vmatpush.msrb.mxu1 %v1825_v49 }
 0x965   :  { %1107 = vmatpush.msra.mxu2 %v1862_v54  ;;  %1081 = vmatpush.msrb.mxu1 %v1829_v50 }
 0x967   :  { %1108 = vmatpush.msra.mxu2 %v1870_v55  ;;  %1082 = vmatpush.msrb.mxu1 %v1835_v51 }
 0x979   :  { %v705_v4 = vpop.permute.xlu0 %704 }
 0x97a   :  { %1465 = vmatmul.msk.f32.vlgmr.msra.gmra.mxu0 %vm265_vm7, %v705_v4 }
 0x97b   :  { %1026 = vmatpush.msra.mxu0 %v1712_v2 }
 0x97d   :  { %1027 = vmatpush.msra.mxu0 %v1718_v3 }
 0x97f   :  { %1028 = vmatpush.msra.mxu0 %v1726_v5 }
 0x981   :  { %1029 = vmatpush.msra.mxu0 %v1758_v7 }
 0x9dd   :  { %v751_v47 = vpop.f32.mrf.mxu1 }
 0x9e3   :  { %v793_v42 = vpop.f32.mrf.mxu2 }
 0x9e4   :  { %v796_v43 = vadd.f32 %v793_v42, %v2066_v41 }
 0x9e6   :  { %1551 = vtanh.f32 %v796_v43 }
 0x9ec   :  { %v1552_v44 = vpop.eup %1551 }
 0x9ed   :  { %v798_v45 = vmul.f32 0.5, %v1552_v44 }
 0x9ef   :  { %v799_v22 = vadd.f32 0.5, %v798_v45 }
 0x9f1   :  { %v800_v46 = vsel %vm297_vm8, %v1552_v44, %v799_v22 }
 0x9f2   :  { %806 = vrot.lane.b32.xlu2 %v800_v46, %s1640_s4  ;;  %v804_v6 = vmul.f32 %v802_v1, %v800_v46 }
 0x9f7   :  { %v725_v26 = vpop.f32.mrf.mxu0 }
 0x9f8   :  { %v752_v56 = vadd.f32 %v751_v47, %v725_v26 }
 0x9fa   :  { %v754_v57 = vadd.f32 %v1895_v63, %v752_v56 }
 0x9fc   :  { %1553 = vtanh.f32 %v754_v57 }
 0xa02   :  { %v1554_v31 = vpop.eup %1553 }
 0xa03   :  { %v756_v9 = vmul.f32 0.5, %v1554_v31 }
 0xa05   :  { %v757_v58 = vadd.f32 0.5, %v756_v9 }
 0xa07   :  { %v758_v59 = vsel %vm297_vm8, %v1554_v31, %v757_v58 }
 0xa08   :  { %761 = vrot.lane.b32.xlu1 %v758_v59, %s1640_s4  ;;  %v759_v12 = vmul.f32 %v758_v59, %v2036_v24 }
 0xa4c   :  { %v807_v60 = vpop.permute.xlu2 %806 }
 0xa4d   :  { %v809_v61 = vmul.f32 %v807_v60, %v800_v46 }
 0xa4f   :  { %811 = vrot.lane.b32.xlu1 %v809_v61, %s1640_s4 }
 0xa7a   :  { %v762_v62 = vpop.permute.xlu1 %761 }
 0xa7b   :  { %v764_v0 = vmul.f32 %v762_v62, %v758_v59 }
 0xa7d   :  { %766 = vrot.lane.b32.xlu0 %v764_v0, %s1640_s4 }
 0xac1   :  { %v812_v8 = vpop.permute.xlu1 %811 }
 0xac2   :  { %v814_v10 = vadd.f32 %v812_v8, %v804_v6 }
 0xac4   :  { %1555 = vtanh.f32 %v814_v10  ;;  %v922_v33 = vrot.slane %v814_v10, 6 }
 0xaca   :  { %v1556_v11 = vpop.eup %1555 }
 0xacb   :  { %817 = vrot.lane.b32.xlu0 %v1556_v11, %s1640_s4 }
 0xaef   :  { %v767_v34 = vpop.permute.xlu0 %766 }
 0xaf0   :  { %v769_v13 = vadd.f32 %v767_v34, %v759_v12 }
 0xaf2   :  { %1557 = vtanh.f32 %v769_v13 }
 0xaf8   :  { %v1558_v14 = vpop.eup %1557 }
 0xaf9   :  { %772 = vrot.lane.b32.xlu2 %v1558_v14, %s1640_s4 }
 0xb3d   :  { %v818_v15 = vpop.permute.xlu0 %817 }
 0xb3e   :  { %v820_v16 = vmul.f32 %v818_v15, %v800_v46 }
 0xb40   :  { %847 = vrot.lane.b32.xlu2 %v820_v16, %s1641_s5 }
 0xb53   :  { %v773_v17 = vpop.permute.xlu2 %772 }
 0xb54   :  { %v775_v18 = vmul.f32 %v773_v17, %v758_v59 }
 0xb56   :  { %v1260_v19 = vrot.slane %v775_v18, 2  ;;  %822 = vrot.lane.b32.xlu1 %v775_v18, %s1641_s5 }
 0xb58   :  { %v2086_v20 = vsel %vm251_vm5, %v2047_v39, %v1260_v19 }
 0xb9a   :  { %v848_v21 = vpop.permute.xlu2 %847 }
 0xb9b   :  { %1469 = vmatmul.msk.f32.vlgmr.msrb.gmra.mxu0 %vm265_vm7, %v848_v21  ;;  %1470 = vmatmul.msk.f32.vlgmr.msra.gmra.mxu1 %vm265_vm7, %v848_v21 }
 0xb9c   :  { %1226 = vmatpush.msra.mxu1 %v1844_v52  ;;  %1200 = vmatpush.msrb.mxu0 %v1823_v48 }
 0xb9e   :  { %1227 = vmatpush.msra.mxu1 %v1854_v53  ;;  %1201 = vmatpush.msrb.mxu0 %v1825_v49 }
 0xba0   :  { %1228 = vmatpush.msra.mxu1 %v1862_v54  ;;  %1202 = vmatpush.msrb.mxu0 %v1829_v50 }
 0xba2   :  { %1229 = vmatpush.msra.mxu1 %v1870_v55  ;;  %1203 = vmatpush.msrb.mxu0 %v1835_v51 }
 0xbc8   :  { %v823_v23 = vpop.permute.xlu1 %822 }
 0xbc9   :  { %1468 = vmatmul.msk.f32.vlgmr.msra.gmra.mxu3 %vm265_vm7, %v823_v23 }
 0xbca   :  { %1147 = vmatpush.msra.mxu3 %v1712_v2 }
 0xbcc   :  { %1148 = vmatpush.msra.mxu3 %v1718_v3 }
 0xbce   :  { %1149 = vmatpush.msra.mxu3 %v1726_v5 }
 0xbd0   :  { %1150 = vmatpush.msra.mxu3 %v1758_v7 }
 0xc18   :  { %v910_v48 = vpop.f32.mrf.mxu1  ;;  %v868_v2 = vpop.f32.mrf.mxu0 }
 0xc19   :  { %v914_v49 = vrot.slane %v910_v48, 6 }
 0xc1b   :  { %v916_v52 = vadd.f32 %v914_v49, %v2066_v41 }
 0xc1d   :  { %1559 = vtanh.f32 %v916_v52 }
 0xc23   :  { %v1560_v50 = vpop.eup %1559 }
 0xc24   :  { %v918_v53 = vmul.f32 0.5, %v1560_v50 }
 0xc26   :  { %v919_v54 = vadd.f32 0.5, %v918_v53 }
 0xc28   :  { %v920_v51 = vsel %vm297_vm8, %v1560_v50, %v919_v54 }
 0xc29   :  { %926 = vrot.lane.b32.xlu0 %v920_v51, %s1640_s4  ;;  %v924_v35 = vmul.f32 %v922_v33, %v920_v51 }
 0xc4c   :  { %v843_v55 = vpop.f32.mrf.mxu3 }
 0xc4d   :  { %v869_v3 = vadd.f32 %v868_v2, %v843_v55 }
 0xc4f   :  { %v871_v5 = vadd.f32 %v1895_v63, %v869_v3 }
 0xc51   :  { %1561 = vtanh.f32 %v871_v5 }
 0xc57   :  { %v1562_v7 = vpop.eup %1561 }
 0xc58   :  { %v873_v24 = vmul.f32 0.5, %v1562_v7 }
 0xc5a   :  { %v874_v25 = vadd.f32 0.5, %v873_v24 }
 0xc5c   :  { %v875_v27 = vsel %vm297_vm8, %v1562_v7, %v874_v25 }
 0xc5d   :  { %878 = vrot.lane.b32.xlu1 %v875_v27, %s1640_s4  ;;  %v876_v40 = vmul.f32 %v875_v27, %v769_v13 }
 0xc9b   :  { %v927_v28 = vpop.permute.xlu0 %926 }
 0xc9c   :  { %v929_v29 = vmul.f32 %v927_v28, %v920_v51 }
 0xc9e   :  { %931 = vrot.lane.b32.xlu2 %v929_v29, %s1640_s4 }
 0xccf   :  { %v879_v30 = vpop.permute.xlu1 %878 }
 0xcd0   :  { %v881_v32 = vmul.f32 %v879_v30, %v875_v27 }
 0xcd2   :  { %883 = vrot.lane.b32.xlu0 %v881_v32, %s1640_s4 }
 0xcf8   :  { %v932_v36 = vpop.permute.xlu2 %931 }
 0xcf9   :  { %v934_v38 = vadd.f32 %v932_v36, %v924_v35 }
 0xcfb   :  { %1563 = vtanh.f32 %v934_v38  ;;  %v1043_v16 = vrot.slane %v934_v38, 6 }
 0xd01   :  { %v1564_v39 = vpop.eup %1563 }
 0xd02   :  { %937 = vrot.lane.b32.xlu1 %v1564_v39, %s1640_s4 }
 0xd44   :  { %v884_v4 = vpop.permute.xlu0 %883 }
 0xd45   :  { %v886_v42 = vadd.f32 %v884_v4, %v876_v40 }
 0xd47   :  { %1565 = vtanh.f32 %v886_v42 }
 0xd4d   :  { %v1566_v43 = vpop.eup %1565 }
 0xd4e   :  { %889 = vrot.lane.b32.xlu2 %v1566_v43, %s1640_s4 }
 0xd74   :  { %v938_v44 = vpop.permute.xlu1 %937 }
 0xd75   :  { %v940_v45 = vmul.f32 %v938_v44, %v920_v51 }
 0xd77   :  { %v967_v22 = vrot.slane %v940_v45, 2 }
 0xd79   :  { %968 = vrot.lane.b32.xlu0 %v967_v22, %s1641_s5 }
 0xda8   :  { %v890_v46 = vpop.permute.xlu2 %889 }
 0xda9   :  { %v2116_v47 = vmul.f32 %v890_v46, %v875_v27 }
 0xdab   :  { %942 = vrot.lane.b32.xlu1 %v2116_v47, %s1641_s5 }
 0xdeb   :  { %v969_v26 = vpop.permute.xlu0 %968 }
 0xdec   :  { %1472 = vmatmul.msk.f32.vlgmr.msrb.gmra.mxu3 %vm265_vm7, %v969_v26  ;;  %1473 = vmatmul.msk.f32.vlgmr.msra.gmra.mxu0 %vm265_vm7, %v969_v26 }
 0xe1d   :  { %v943_v56 = vpop.permute.xlu1 %942 }
 0xe1e   :  { %1471 = vmatmul.msk.f32.vlgmr.msrb.gmra.mxu2 %vm265_vm7, %v943_v56 }
 0xe69   :  { %v1031_v57 = vpop.f32.mrf.mxu0 }
 0xe6a   :  { %v1035_v31 = vrot.slane %v1031_v57, 4 }
 0xe6c   :  { %v1037_v9 = vadd.f32 %v1035_v31, %v2066_v41 }
 0xe6e   :  { %1567 = vtanh.f32 %v1037_v9 }
 0xe6f   :  { %v989_v62 = vpop.f32.mrf.mxu3 }
 0xe74   :  { %v1568_v58 = vpop.eup %1567 }
 0xe75   :  { %v1039_v59 = vmul.f32 0.5, %v1568_v58 }
 0xe77   :  { %v1040_v60 = vadd.f32 0.5, %v1039_v59 }
 0xe79   :  { %v1041_v61 = vsel %vm297_vm8, %v1568_v58, %v1040_v60 }
 0xe7a   :  { %1047 = vrot.lane.b32.xlu2 %v1041_v61, %s1640_s4  ;;  %v1045_v17 = vmul.f32 %v1043_v16, %v1041_v61 }
 0xea1   :  { %v963_v0 = vpop.f32.mrf.mxu2 }
 0xea2   :  { %v990_v1 = vadd.f32 %v989_v62, %v963_v0 }
 0xea4   :  { %v992_v6 = vadd.f32 %v1895_v63, %v990_v1 }
 0xea6   :  { %1569 = vtanh.f32 %v992_v6 }
 0xeac   :  { %v1570_v8 = vpop.eup %1569 }
 0xead   :  { %v994_v10 = vmul.f32 0.5, %v1570_v8 }
 0xeaf   :  { %v995_v11 = vadd.f32 0.5, %v994_v10 }
 0xeb1   :  { %v996_v12 = vsel %vm297_vm8, %v1570_v8, %v995_v11 }
 0xeb2   :  { %999 = vrot.lane.b32.xlu0 %v996_v12, %s1640_s4  ;;  %v997_v23 = vmul.f32 %v996_v12, %v886_v42 }
 0xed4   :  { %v1048_v34 = vpop.permute.xlu2 %1047 }
 0xed5   :  { %v1050_v13 = vmul.f32 %v1048_v34, %v1041_v61 }
 0xed7   :  { %1052 = vrot.lane.b32.xlu1 %v1050_v13, %s1640_s4 }
 0xf24   :  { %v1000_v14 = vpop.permute.xlu0 %999 }
 0xf25   :  { %v1002_v15 = vmul.f32 %v1000_v14, %v996_v12 }
 0xf27   :  { %1004 = vrot.lane.b32.xlu2 %v1002_v15, %s1640_s4 }
 0xf49   :  { %v1053_v18 = vpop.permute.xlu1 %1052 }
 0xf4a   :  { %v1055_v19 = vadd.f32 %v1053_v18, %v1045_v17  ;;  %v85_v18 = vld [vmem:[%s2206_s8 + $0x18] sm:$0xff] }
 0xf4b   :  { %1300 = vmatpush.msrb.mxu2 %v85_v18 }
 0xf4c   :  { %1571 = vtanh.f32 %v1055_v19  ;;  %v1164_v44 = vrot.slane %v1055_v19, 6  ;;  %v83_v19 = vld [vmem:[%s2206_s8 + $0x8] sm:$0xff] }
 0xf52   :  { %v1572_v21 = vpop.eup %1571 }
 0xf53   :  { %1058 = vrot.lane.b32.xlu0 %v1572_v21, %s1640_s4 }
 0xf81   :  { %v1005_v48 = vpop.permute.xlu2 %1004 }
 0xf82   :  { %v1007_v49 = vadd.f32 %v1005_v48, %v997_v23 }
 0xf84   :  { %1573 = vtanh.f32 %v1007_v49 }
 0xf8a   :  { %v1574_v52 = vpop.eup %1573 }
 0xf8b   :  { %1010 = vrot.lane.b32.xlu1 %v1574_v52, %s1640_s4 }
 0xfc5   :  { %v1059_v50 = vpop.permute.xlu0 %1058 }
 0xfc6   :  { %v1061_v53 = vmul.f32 %v1059_v50, %v1041_v61 }
 0xfc8   :  { %v1088_v54 = vrot.slane %v1061_v53, 4  ;;  %v1522_v53 = vld [vmem:[%s2207_s9] ss:$0 sm:$0xff] }
 0xfca   :  { %1089 = vrot.lane.b32.xlu2 %v1088_v54, %s1641_s5 }
 0xffd   :  { %v1011_v51 = vpop.permute.xlu1 %1010 }
 0xffe   :  { %v1013_v2 = vmul.f32 %v1011_v51, %v996_v12 }
0x1000   :  { %1063 = vrot.lane.b32.xlu0 %v1013_v2, %s1641_s5  ;;  %v1262_v61 = vrot.slane %v1013_v2, 6 }
0x1002   :  { %v1272_v6 = vsel %vm243_vm1, %v2116_v47, %v1262_v61 }
0x1024   :  { %v1090_v55 = vpop.permute.xlu2 %1089 }
0x1025   :  { %1475 = vmatmul.msk.f32.vlgmr.msra.gmra.mxu2 %vm265_vm7, %v1090_v55  ;;  %1476 = vmatmul.msk.f32.vlgmr.msra.gmra.mxu3 %vm265_vm7, %v1090_v55 }
0x1072   :  { %v1064_v3 = vpop.permute.xlu0 %1063 }
0x1073   :  { %1474 = vmatmul.msk.f32.vlgmr.msrb.gmra.mxu1 %vm265_vm7, %v1064_v3 }
0x10a8   :  { %v1152_v5 = vpop.f32.mrf.mxu3  ;;  %v1110_v30 = vpop.f32.mrf.mxu2 }
0x10a9   :  { %v1156_v7 = vrot.slane %v1152_v5, 2 }
0x10ab   :  { %v1158_v24 = vadd.f32 %v1156_v7, %v2066_v41 }
0x10ad   :  { %1575 = vtanh.f32 %v1158_v24 }
0x10b3   :  { %v1576_v25 = vpop.eup %1575 }
0x10b4   :  { %v1160_v27 = vmul.f32 0.5, %v1576_v25 }
0x10b6   :  { %v1161_v28 = vadd.f32 0.5, %v1160_v27 }
0x10b8   :  { %v1162_v29 = vsel %vm297_vm8, %v1576_v25, %v1161_v28 }
0x10b9   :  { %1168 = vrot.lane.b32.xlu1 %v1162_v29, %s1640_s4  ;;  %v1166_v45 = vmul.f32 %v1164_v44, %v1162_v29 }
0x10f0   :  { %v1084_v32 = vpop.f32.mrf.mxu1 }
0x10f1   :  { %v1111_v33 = vadd.f32 %v1110_v30, %v1084_v32 }
0x10f3   :  { %v1113_v35 = vadd.f32 %v1895_v63, %v1111_v33 }
0x10f5   :  { %1577 = vtanh.f32 %v1113_v35 }
0x10fb   :  { %v1578_v36 = vpop.eup %1577 }
0x10fc   :  { %v1115_v38 = vmul.f32 0.5, %v1578_v36 }
0x10fe   :  { %v1116_v39 = vadd.f32 0.5, %v1115_v38 }
0x1100   :  { %v1117_v41 = vsel %vm297_vm8, %v1578_v36, %v1116_v39 }
0x1101   :  { %1120 = vrot.lane.b32.xlu2 %v1117_v41, %s1640_s4  ;;  %v1118_v56 = vmul.f32 %v1117_v41, %v1007_v49 }
0x112b   :  { %v1169_v40 = vpop.permute.xlu1 %1168 }
0x112c   :  { %v1171_v4 = vmul.f32 %v1169_v40, %v1162_v29 }
0x112e   :  { %1173 = vrot.lane.b32.xlu0 %v1171_v4, %s1640_s4 }
0x115b   :  { %v1121_v42 = vpop.permute.xlu2 %1120 }
0x115c   :  { %v1123_v43 = vmul.f32 %v1121_v42, %v1117_v41 }
0x115e   :  { %1125 = vrot.lane.b32.xlu1 %v1123_v43, %s1640_s4 }
0x11a0   :  { %v1174_v22 = vpop.permute.xlu0 %1173 }
0x11a1   :  { %v1176_v46 = vadd.f32 %v1174_v22, %v1166_v45 }
0x11a3   :  { %1579 = vtanh.f32 %v1176_v46 }
0x11a9   :  { %v1580_v26 = vpop.eup %1579 }
0x11aa   :  { %1179 = vrot.lane.b32.xlu2 %v1580_v26, %s1640_s4 }
0x11d0   :  { %v1126_v57 = vpop.permute.xlu1 %1125 }
0x11d1   :  { %v1128_v31 = vadd.f32 %v1126_v57, %v1118_v56 }
0x11d3   :  { %1581 = vtanh.f32 %v1128_v31 }
0x11d9   :  { %v1582_v9 = vpop.eup %1581 }
0x11da   :  { %1131 = vrot.lane.b32.xlu0 %v1582_v9, %s1640_s4 }
0x1204   :  { %v1180_v58 = vpop.permute.xlu2 %1179 }
0x1205   :  { %v1182_v59 = vmul.f32 %v1180_v58, %v1162_v29 }
0x1207   :  { %v1209_v60 = vrot.slane %v1182_v59, 6 }
0x1209   :  { %1210 = vrot.lane.b32.xlu2 %v1209_v60, %s1641_s5 }
0x124c   :  { %v1132_v62 = vpop.permute.xlu0 %1131 }
0x124d   :  { %v1134_v0 = vmul.f32 %v1132_v62, %v1117_v41 }
0x124f   :  { %v1264_v1 = vrot.slane %v1134_v0, 4  ;;  %1184 = vrot.lane.b32.xlu1 %v1134_v0, %s1641_s5 }
0x1251   :  { %v1273_v8 = vsel %vm247_vm3, %v1272_v6, %v1264_v1 }
0x1263   :  { %v1211_v10 = vpop.permute.xlu2 %1210 }
0x1264   :  { %1478 = vmatmul.msk.f32.vlgmr.msra.gmra.mxu1 %vm265_vm7, %v1211_v10 }
0x12c1   :  { %v1185_v11 = vpop.permute.xlu1 %1184 }
0x12c2   :  { %1477 = vmatmul.msk.f32.vlgmr.msrb.gmra.mxu0 %vm265_vm7, %v1185_v11 }
0x12e1   :  { %v1231_v12 = vpop.f32.mrf.mxu1 }
0x133f   :  { %v1205_v34 = vpop.f32.mrf.mxu0 }
0x1340   :  { %v1232_v13 = vadd.f32 %v1231_v12, %v1205_v34 }
0x1342   :  { %v1234_v14 = vadd.f32 %v1895_v63, %v1232_v13  ;;  %v84_v63 = vld [vmem:[%s2206_s8 + $0x10] sm:$0xff] }
0x1343   :  { %1301 = vmatpush.msrb.mxu2 %v84_v63 }
0x1344   :  { %1583 = vtanh.f32 %v1234_v14 }
0x1345   :  { %1302 = vmatpush.msrb.mxu2 %v83_v19 }
0x1347   :  { %1303 = vmatpush.msrb.mxu2 %v82_v37 }
0x134a   :  { %v1584_v15 = vpop.eup %1583 }
0x134b   :  { %v1236_v16 = vmul.f32 0.5, %v1584_v15 }
0x134d   :  { %v1237_v17 = vadd.f32 0.5, %v1236_v16 }
0x134f   :  { %v1238_v47 = vsel %vm297_vm8, %v1584_v15, %v1237_v17 }
0x1350   :  { %1241 = vrot.lane.b32.xlu0 %v1238_v47, %s1640_s4  ;;  %v1239_v48 = vmul.f32 %v1238_v47, %v1128_v31 }
0x1358   :  { %1280 = vrot.lane.b32.xlu0 %v2086_v20, %s1641_s5 }
0x13c2   :  { %v1242_v20 = vpop.permute.xlu0 %1241 }
0x13c3   :  { %v1244_v21 = vmul.f32 %v1242_v20, %v1238_v47 }
0x13c5   :  { %1246 = vrot.lane.b32.xlu1 %v1244_v21, %s1640_s4 }
0x13ca   :  { %v1281_v23 = vpop.permute.xlu0 %1280 }
0x13cb   :  { %1479 = vmatmul.msk.f32.vlgmr.msrb.gmra.mxu2 %vm265_vm7, %v1281_v23 }
0x1437   :  { %v1247_v49 = vpop.permute.xlu1 %1246 }
0x1438   :  { %v1249_v52 = vadd.f32 %v1247_v49, %v1239_v48 }
0x143a   :  { %1585 = vtanh.f32 %v1249_v52 }
0x1440   :  { %v1586_v50 = vpop.eup %1585 }
0x1441   :  { %1252 = vrot.lane.b32.xlu2 %v1586_v50, %s1640_s4 }
0x144e   :  { %v1305_v54 = vpop.f32.mrf.mxu2 }
0x144f   :  { %v1306_v51 = vadd.f32 %v1522_v53, %v1305_v54 }
0x1451   :  { %v1312_v2 = vsel %vm1311_vm9, %v1306_v51, -inf }
0x146a   :  { %1313 = vmax.xlane.f32.xlu2 %v1312_v2 }
0x149b   :  { %v1253_v55 = vpop.permute.xlu2 %1252 }
0x149c   :  { %v1255_v3 = vmul.f32 %v1253_v55, %v1238_v47 }
0x149e   :  { %v1267_v5 = vrot.slane %v1255_v3, 2 }
0x14a0   :  { %v1274_v7 = vsel %vm251_vm5, %v1273_v8, %v1267_v5 }
0x14a1   :  { %1282 = vrot.lane.b32.xlu1 %v1274_v7, %s1641_s5 }
0x14dd   :  { %v1314_v24 = vpop.xlane.xlu2 %1313 }
0x14de   :  { %v1318_v25 = vsub.f32 %v1306_v51, %v1314_v24 }
0x14e0   :  { %v1320_v27 = vmul.f32 1.442695, %v1318_v25 }
0x14e2   :  { %1587 = vpow2.f32 %v1320_v27 }
0x14e8   :  { %v1588_v28 = vpop.eup %1587 }
0x14e9   :  { %v1324_v29 = vsel %vm1311_vm9, %v1588_v28, 0.0 }
0x14ea   :  { %1325 = vadd.xlane.f32.xlu1 %v1324_v29 }
0x1513   :  { %v1283_v30 = vpop.permute.xlu1 %1282 }
0x1514   :  { %1480 = vmatmul.msk.f32.gmra.mxu2 %vm265_vm7, %v1283_v30 }
0x155d   :  { %v1326_v32 = vpop.xlane.xlu1 %1325 }
0x155e   :  { %1589 = vlog2.f32 %v1326_v32 }
0x1564   :  { %v1590_v33 = vpop.eup %1589 }
0x1565   :  { %v1331_v35 = vmul.f32 0.6931472, %v1590_v33 }
0x1567   :  { %v1334_v36 = vsub.f32 %v1318_v25, %v1331_v35 }
0x1569   :  { %1336 = vst.msk [vmem:[%s2208_s10] sm:$0xff] %vm1311_vm9, %v1334_v36 }
0x1597   :  { %v1308_v38 = vpop.f32.mrf.mxu2 }
0x1598   :  { %v1309_v39 = vadd.f32 %v1522_v53, %v1308_v38 }
0x159a   :  { %v1315_v41 = vsel %vm1311_vm9, %v1309_v39, -inf }
0x159b   :  { %1316 = vmax.xlane.f32.xlu0 %v1315_v41 }
0x160e   :  { %v1317_v40 = vpop.xlane.xlu0 %1316 }
0x160f   :  { %v1319_v4 = vsub.f32 %v1309_v39, %v1317_v40 }
0x1611   :  { %v1322_v42 = vmul.f32 1.442695, %v1319_v4 }
0x1613   :  { %1591 = vpow2.f32 %v1322_v42 }
0x1619   :  { %v1592_v43 = vpop.eup %1591 }
0x161a   :  { %v1327_v44 = vsel %vm1311_vm9, %v1592_v43, 0.0 }
0x161b   :  { %1328 = vadd.xlane.f32.xlu2 %v1327_v44 }
0x168e   :  { %v1329_v45 = vpop.xlane.xlu2 %1328 }
0x168f   :  { %1593 = vlog2.f32 %v1329_v45 }
0x1695   :  { %v1594_v22 = vpop.eup %1593 }
0x1696   :  { %v1333_v46 = vmul.f32 0.6931472, %v1594_v22 }
0x1698   :  { %v1335_v26 = vsub.f32 %v1319_v4, %v1333_v46 }
0x169a   :  { %1337 = vst.msk [vmem:[%s2208_s10 + $0x8] sm:$0xff] %vm1311_vm9, %v1335_v26 }
0x169b   :  { %1342 = vsyncpa [#allocation3], 1 }
0x169c   :  { %1343 = vsyncpa [#allocation4], 1 }

</bundles_post_ra>
